<compile_context>
chip_gen: v7x
topology: tpu7x:2x2x1
jax: 0.10.0
libtpu: 0.0.40
codegen_flags: <defaults>
</compile_context>

<pallas_src>
import jax
import jax.numpy as jnp
from jax.experimental import pallas as pl
from jax.experimental.pallas import tpu as pltpu


LANE = 128  # TPU lane width; keep every last dim a multiple of this


def _round_up(x, m):
    return ((x + m - 1) // m) * m


def _chunk_rows(h):
    for c in (8, 4, 2, 1):
        if h % c == 0:
            return c
    return 1


def basic_block_kernel(p1_ref, w1_ref, b1_ref, w2_ref, b2_ref, res_ref,
                       o_ref, mid_ref):
    """One batch image per grid step.

    p1_ref : (1, H*W, K1p)  bf16  im2col patches of the spatially padded input
    w1_ref : (K1p, Cp)      bf16  conv1 weight (BN1 scale folded), im2col layout
    b1_ref : (1, Cp)        f32   BN1 shift
    w2_ref : (9, Cp, Cp)    bf16  conv2 per-tap weights (BN2 scale folded)
    b2_ref : (1, Cp)        f32   BN2 shift
    res_ref: (1, H*W, Cp)   f32   residual (original x, channel padded)
    o_ref  : (1, H*W, Cp)   f32   output (lane-dense last dim)
    mid_ref: (H+2, W+2, Cp) f32   scratch: zero-bordered conv1 activation
    """
    Hp, Wp, C = mid_ref.shape
    H, W = Hp - 2, Wp - 2
    CH = _chunk_rows(H)  # image rows per chunk -> bounded vreg pressure

    # Zero only the 1-pixel border of the scratch; the interior is fully
    # overwritten below.  Done every step (cheap: 4 thin strips) instead of
    # once under pl.when(program_id==0) so the kernel remains correct when the
    # parallel grid axis is split across TensorCores (per-core scratch).
    zrow = jnp.zeros((1, Wp, C), mid_ref.dtype)
    zcol = jnp.zeros((Hp, 1, C), mid_ref.dtype)
    mid_ref[0:1, :, :] = zrow
    mid_ref[H + 1:H + 2, :, :] = zrow
    mid_ref[:, 0:1, :] = zcol
    mid_ref[:, W + 1:W + 2, :] = zcol

    # ---- conv1 (+ folded bn1) + relu : one im2col matmul per row-chunk ----
    for c0 in range(0, H, CH):
        r0, r1 = c0 * W, (c0 + CH) * W
        acc = jnp.dot(p1_ref[0, r0:r1, :], w1_ref[...],
                      preferred_element_type=jnp.float32)
        act = jnp.maximum(acc + b1_ref[...], 0.0)
        mid_ref[1 + c0:1 + c0 + CH, 1:1 + W, :] = act.reshape(CH, W, C)

    # ---- conv2 (+ folded bn2) + residual + relu : 9 taps per row-chunk ----
    for c0 in range(0, H, CH):
        r0, r1 = c0 * W, (c0 + CH) * W
        acc = res_ref[0, r0:r1, :] + b2_ref[...]
        for kh in range(3):
            for kw in range(3):
                patch = mid_ref[c0 + kh:c0 + kh + CH, kw:kw + W, :]
                patch = patch.reshape(CH * W, C).astype(jnp.bfloat16)
                acc = acc + jnp.dot(patch, w2_ref[kh * 3 + kw],
                                    preferred_element_type=jnp.float32)
        o_ref[0, r0:r1, :] = jnp.maximum(acc, 0.0)


def basic_block(x_nchw, w1, g1, be1, m1, v1, w2, g2, be2, m2, v2, eps=1e-5):
    """BasicBlock forward. x_nchw: (N, C, H, W) f32; conv weights in OIHW."""
    N, Cin, H, W = x_nchw.shape
    Cout = w1.shape[0]
    assert Cin == Cout, "stride=1 / downsample=None path requires Cin == Cout"
    # TODO(synk): stride>1 / downsample branch not implemented.

    Cp = _round_up(max(Cout, LANE), LANE)       # lane-dense channel padding
    K1 = 9 * Cin
    K1p = _round_up(max(K1, LANE), LANE)

    x = jnp.transpose(x_nchw, (0, 2, 3, 1)).astype(jnp.float32)   # NHWC

    # Fold inference-mode BatchNorm: scale into conv weights, shift as a bias.
    s1 = g1 / jnp.sqrt(v1 + eps)
    s2 = g2 / jnp.sqrt(v2 + eps)
    b1p = jnp.pad((be1 - m1 * s1).astype(jnp.float32), (0, Cp - Cout)).reshape(1, Cp)
    b2p = jnp.pad((be2 - m2 * s2).astype(jnp.float32), (0, Cp - Cout)).reshape(1, Cp)

    # conv1 weight: OIHW -> (kh,kw,ci,co) -> (9*Cin, Cout), pad, bf16
    w1f = (w1 * s1[:, None, None, None]).astype(jnp.float32)
    w1m = jnp.transpose(w1f, (2, 3, 1, 0)).reshape(K1, Cout)
    w1m = jnp.pad(w1m, ((0, K1p - K1), (0, Cp - Cout))).astype(jnp.bfloat16)

    # conv2 weight: OIHW -> HWIO, pad channels, (9, Cp, Cp), bf16
    w2f = (w2 * s2[:, None, None, None]).astype(jnp.float32)
    w2m = jnp.transpose(w2f, (2, 3, 1, 0))                     # (3,3,Cout,Cout)
    w2m = jnp.pad(w2m, ((0, 0), (0, 0), (0, Cp - Cout), (0, Cp - Cout)))
    w2m = w2m.reshape(9, Cp, Cp).astype(jnp.bfloat16)

    # im2col of the spatially padded input: conv1 becomes one matmul (K = K1p).
    xp = jnp.pad(x, ((0, 0), (1, 1), (1, 1), (0, 0)))
    taps = [xp[:, kh:kh + H, kw:kw + W, :] for kh in range(3) for kw in range(3)]
    p1 = jnp.concatenate(taps, axis=-1).reshape(N, H * W, K1)
    p1 = jnp.pad(p1, ((0, 0), (0, 0), (0, K1p - K1))).astype(jnp.bfloat16)

    # Residual, channel padded with zeros (padded lanes stay zero throughout).
    res = jnp.pad(x, ((0, 0), (0, 0), (0, 0), (0, Cp - Cin))).reshape(N, H * W, Cp)

    HW = H * W
    out = pl.pallas_call(
        basic_block_kernel,
        out_shape=jax.ShapeDtypeStruct((N, HW, Cp), jnp.float32),
        grid=(N,),
        in_specs=[
            pl.BlockSpec((1, HW, K1p), lambda n: (n, 0, 0)),
            pl.BlockSpec((K1p, Cp), lambda n: (0, 0)),
            pl.BlockSpec((1, Cp), lambda n: (0, 0)),
            pl.BlockSpec((9, Cp, Cp), lambda n: (0, 0, 0)),
            pl.BlockSpec((1, Cp), lambda n: (0, 0)),
            pl.BlockSpec((1, HW, Cp), lambda n: (n, 0, 0)),
        ],
        out_specs=pl.BlockSpec((1, HW, Cp), lambda n: (n, 0, 0)),
        scratch_shapes=[pltpu.VMEM((H + 2, W + 2, Cp), jnp.float32)],
        compiler_params=pltpu.CompilerParams(
            dimension_semantics=("parallel",),
            vmem_limit_bytes=32 * 1024 * 1024),   # fits v7x's smaller VMEM too
    )(p1, w1m, b1p, w2m, b2p, res)

    out = out.reshape(N, H, W, Cp)[:, :, :, :Cout]
    return jnp.transpose(out, (0, 3, 1, 2))       # back to NCHW


def basic_block_reference(x, w1, g1, be1, m1, v1, w2, g2, be2, m2, v2, eps=1e-5):
    """Pure-JAX f32 reference in NCHW, mirroring the PyTorch forward."""
    dn = ("NCHW", "OIHW", "NCHW")

    def bn(y, g, b, m, v):
        inv = (g / jnp.sqrt(v + eps)).reshape(1, -1, 1, 1)
        return y * inv + (b - m * g / jnp.sqrt(v + eps)).reshape(1, -1, 1, 1)

    out = jax.lax.conv_general_dilated(x, w1, (1, 1), "SAME", dimension_numbers=dn)
    out = jnp.maximum(bn(out, g1, be1, m1, v1), 0.0)
    out = jax.lax.conv_general_dilated(out, w2, (1, 1), "SAME", dimension_numbers=dn)
    out = bn(out, g2, be2, m2, v2)
    return jnp.maximum(out + x, 0.0)


if __name__ == "__main__":
    N, C, H, W = 2, 4, 16, 16   # in_channels = out_channels = 4, stride = 1
    key = jax.random.PRNGKey(0)
    ks = jax.random.split(key, 11)

    x = jax.random.normal(ks[0], (N, C, H, W), jnp.float32)

    # conv weights (OIHW), deterministic init
    w1 = jax.random.normal(ks[1], (C, C, 3, 3), jnp.float32) * 0.1
    w2 = jax.random.normal(ks[2], (C, C, 3, 3), jnp.float32) * 0.1

    # BatchNorm params / running stats
    g1 = 0.5 + jax.random.uniform(ks[3], (C,), jnp.float32)
    be1 = jax.random.normal(ks[4], (C,), jnp.float32) * 0.1
    m1 = jax.random.normal(ks[5], (C,), jnp.float32) * 0.1
    v1 = 0.5 + jax.random.uniform(ks[6], (C,), jnp.float32)
    g2 = 0.5 + jax.random.uniform(ks[7], (C,), jnp.float32)
    be2 = jax.random.normal(ks[8], (C,), jnp.float32) * 0.1
    m2 = jax.random.normal(ks[9], (C,), jnp.float32) * 0.1
    v2 = 0.5 + jax.random.uniform(ks[10], (C,), jnp.float32)

    out = basic_block(x, w1, g1, be1, m1, v1, w2, g2, be2, m2, v2)
    out = jax.block_until_ready(out)

    ref = basic_block_reference(x, w1, g1, be1, m1, v1, w2, g2, be2, m2, v2)
    assert out.shape == (N, C, H, W)
    # bf16 MXU inputs with f32 accumulation -> relaxed tolerance vs f32 ref
    err = jnp.max(jnp.abs(out - ref))
    assert err < 5e-2, f"mismatch vs. JAX reference (max abs err {err})"

    print("KERNEL_OK")
</pallas_src>

<mosaic_0001>
module attributes {stable_mosaic.version = 11 : i64} {
  func.func @basic_block_kernel(%arg0: i32, %arg1: memref<1x256x128xbf16, #tpu.memory_space<vmem>>, %arg2: memref<128x128xbf16, #tpu.memory_space<vmem>>, %arg3: memref<1x128xf32, #tpu.memory_space<vmem>>, %arg4: memref<9x128x128xbf16, #tpu.memory_space<vmem>>, %arg5: memref<1x128xf32, #tpu.memory_space<vmem>>, %arg6: memref<1x256x128xf32, #tpu.memory_space<vmem>>, %arg7: memref<1x256x128xf32, #tpu.memory_space<vmem>>, %arg8: memref<18x18x128xf32, #tpu.memory_space<vmem>>) attributes {dimension_semantics = [#tpu.dimension_semantics<parallel>], iteration_bounds = array<i64: 2>, scalar_prefetch = 0 : i64, scratch_operands = 1 : i64, tpu.core_type = #tpu.core_type<tc>, window_params = [{transform_indices = @transform_0, window_bounds = array<i64: 1, 256, 128>}, {pipeline_mode = #tpu.pipeline_mode<synchronous>, transform_indices = @transform_1, window_bounds = array<i64: 128, 128>}, {pipeline_mode = #tpu.pipeline_mode<synchronous>, transform_indices = @transform_2, window_bounds = array<i64: 1, 128>}, {pipeline_mode = #tpu.pipeline_mode<synchronous>, transform_indices = @transform_3, window_bounds = array<i64: 9, 128, 128>}, {pipeline_mode = #tpu.pipeline_mode<synchronous>, transform_indices = @transform_4, window_bounds = array<i64: 1, 128>}, {transform_indices = @transform_5, window_bounds = array<i64: 1, 256, 128>}, {transform_indices = @transform_6, window_bounds = array<i64: 1, 256, 128>}]} {
    %cst = arith.constant 0.000000e+00 : f32
    %0 = vector.broadcast %cst : f32 to vector<1x18x128xf32>
    %cst_0 = arith.constant 0.000000e+00 : f32
    %1 = vector.broadcast %cst_0 : f32 to vector<18x1x128xf32>
    %c0 = arith.constant 0 : index
    %c0_1 = arith.constant 0 : index
    %c0_2 = arith.constant 0 : index
    %2 = vector.load %arg8[%c0, %c0_1, %c0_2] : memref<18x18x128xf32, #tpu.memory_space<vmem>>, vector<1x18x128xf32>
    tpu.vector_store %arg8[%c0, %c0_1, %c0_2], %0 {strides = array<i32>} : memref<18x18x128xf32, #tpu.memory_space<vmem>>, vector<1x18x128xf32>,
    %c17 = arith.constant 17 : index
    %c0_3 = arith.constant 0 : index
    %c0_4 = arith.constant 0 : index
    %3 = vector.load %arg8[%c17, %c0_3, %c0_4] : memref<18x18x128xf32, #tpu.memory_space<vmem>>, vector<1x18x128xf32>
    tpu.vector_store %arg8[%c17, %c0_3, %c0_4], %0 {strides = array<i32>} : memref<18x18x128xf32, #tpu.memory_space<vmem>>, vector<1x18x128xf32>,
    %c0_5 = arith.constant 0 : index
    %c0_6 = arith.constant 0 : index
    %c0_7 = arith.constant 0 : index
    %4 = vector.load %arg8[%c0_5, %c0_6, %c0_7] : memref<18x18x128xf32, #tpu.memory_space<vmem>>, vector<18x1x128xf32>
    tpu.vector_store %arg8[%c0_5, %c0_6, %c0_7], %1 {strides = array<i32>} : memref<18x18x128xf32, #tpu.memory_space<vmem>>, vector<18x1x128xf32>,
    %c0_8 = arith.constant 0 : index
    %c17_9 = arith.constant 17 : index
    %c0_10 = arith.constant 0 : index
    %5 = vector.load %arg8[%c0_8, %c17_9, %c0_10] : memref<18x18x128xf32, #tpu.memory_space<vmem>>, vector<18x1x128xf32>
    tpu.vector_store %arg8[%c0_8, %c17_9, %c0_10], %1 {strides = array<i32>} : memref<18x18x128xf32, #tpu.memory_space<vmem>>, vector<18x1x128xf32>,
    %c0_11 = arith.constant 0 : index
    %c0_12 = arith.constant 0 : index
    %c0_13 = arith.constant 0 : index
    %6 = vector.load %arg1[%c0_11, %c0_12, %c0_13] : memref<1x256x128xbf16, #tpu.memory_space<vmem>>, vector<1x128x128xbf16>
    %7 = vector.shape_cast %6 : vector<1x128x128xbf16> to vector<128x128xbf16>
    %c0_14 = arith.constant 0 : index
    %c0_15 = arith.constant 0 : index
    %8 = vector.load %arg2[%c0_14, %c0_15] : memref<128x128xbf16, #tpu.memory_space<vmem>>, vector<128x128xbf16>
    %cst_16 = arith.constant dense<0.000000e+00> : vector<128x128xf32>
    %9 = tpu.matmul %7, %8, %cst_16 {dimension_numbers = #tpu.dot_dimension_numbers<[1], [0], [0], [1], [0, 0, 1, 1], [], []>} : vector<128x128xbf16>, vector<128x128xbf16>, vector<128x128xf32> -> vector<128x128xf32>
    %c0_17 = arith.constant 0 : index
    %c0_18 = arith.constant 0 : index
    %10 = vector.load %arg3[%c0_17, %c0_18] : memref<1x128xf32, #tpu.memory_space<vmem>>, vector<1x128xf32>
    %11 = vector.broadcast %10 : vector<1x128xf32> to vector<128x128xf32>
    %12 = arith.addf %9, %11 : vector<128x128xf32>
    %cst_19 = arith.constant 0.000000e+00 : f32
    %13 = vector.broadcast %cst_19 : f32 to vector<128x128xf32>
    %14 = arith.maximumf %12, %13 : vector<128x128xf32>
    %15 = vector.shape_cast %14 : vector<128x128xf32> to vector<8x16x128xf32>
    %c1 = arith.constant 1 : index
    %c1_20 = arith.constant 1 : index
    %c0_21 = arith.constant 0 : index
    %16 = vector.load %arg8[%c1, %c1_20, %c0_21] : memref<18x18x128xf32, #tpu.memory_space<vmem>>, vector<8x16x128xf32>
    tpu.vector_store %arg8[%c1, %c1_20, %c0_21], %15 {strides = array<i32>} : memref<18x18x128xf32, #tpu.memory_space<vmem>>, vector<8x16x128xf32>,
    %c0_22 = arith.constant 0 : index
    %c128 = arith.constant 128 : index
    %c0_23 = arith.constant 0 : index
    %17 = vector.load %arg1[%c0_22, %c128, %c0_23] : memref<1x256x128xbf16, #tpu.memory_space<vmem>>, vector<1x128x128xbf16>
    %18 = vector.shape_cast %17 : vector<1x128x128xbf16> to vector<128x128xbf16>
    %c0_24 = arith.constant 0 : index
    %c0_25 = arith.constant 0 : index
    %19 = vector.load %arg2[%c0_24, %c0_25] : memref<128x128xbf16, #tpu.memory_space<vmem>>, vector<128x128xbf16>
    %cst_26 = arith.constant dense<0.000000e+00> : vector<128x128xf32>
    %20 = tpu.matmul %18, %19, %cst_26 {dimension_numbers = #tpu.dot_dimension_numbers<[1], [0], [0], [1], [0, 0, 1, 1], [], []>} : vector<128x128xbf16>, vector<128x128xbf16>, vector<128x128xf32> -> vector<128x128xf32>
    %c0_27 = arith.constant 0 : index
    %c0_28 = arith.constant 0 : index
    %21 = vector.load %arg3[%c0_27, %c0_28] : memref<1x128xf32, #tpu.memory_space<vmem>>, vector<1x128xf32>
    %22 = vector.broadcast %21 : vector<1x128xf32> to vector<128x128xf32>
    %23 = arith.addf %20, %22 : vector<128x128xf32>
    %cst_29 = arith.constant 0.000000e+00 : f32
    %24 = vector.broadcast %cst_29 : f32 to vector<128x128xf32>
    %25 = arith.maximumf %23, %24 : vector<128x128xf32>
    %26 = vector.shape_cast %25 : vector<128x128xf32> to vector<8x16x128xf32>
    %c9 = arith.constant 9 : index
    %c1_30 = arith.constant 1 : index
    %c0_31 = arith.constant 0 : index
    %27 = vector.load %arg8[%c9, %c1_30, %c0_31] : memref<18x18x128xf32, #tpu.memory_space<vmem>>, vector<8x16x128xf32>
    tpu.vector_store %arg8[%c9, %c1_30, %c0_31], %26 {strides = array<i32>} : memref<18x18x128xf32, #tpu.memory_space<vmem>>, vector<8x16x128xf32>,
    %c0_32 = arith.constant 0 : index
    %c0_33 = arith.constant 0 : index
    %c0_34 = arith.constant 0 : index
    %28 = vector.load %arg6[%c0_32, %c0_33, %c0_34] : memref<1x256x128xf32, #tpu.memory_space<vmem>>, vector<1x128x128xf32>
    %29 = vector.shape_cast %28 : vector<1x128x128xf32> to vector<128x128xf32>
    %c0_35 = arith.constant 0 : index
    %c0_36 = arith.constant 0 : index
    %30 = vector.load %arg5[%c0_35, %c0_36] : memref<1x128xf32, #tpu.memory_space<vmem>>, vector<1x128xf32>
    %31 = vector.broadcast %30 : vector<1x128xf32> to vector<128x128xf32>
    %32 = arith.addf %29, %31 : vector<128x128xf32>
    %c0_37 = arith.constant 0 : index
    %c0_38 = arith.constant 0 : index
    %c0_39 = arith.constant 0 : index
    %33 = vector.load %arg8[%c0_37, %c0_38, %c0_39] : memref<18x18x128xf32, #tpu.memory_space<vmem>>, vector<8x16x128xf32>
    %34 = vector.shape_cast %33 : vector<8x16x128xf32> to vector<128x128xf32>
    %35 = arith.truncf %34 : vector<128x128xf32> to vector<128x128xbf16>
    %c0_40 = arith.constant 0 : index
    %c0_41 = arith.constant 0 : index
    %c0_42 = arith.constant 0 : index
    %36 = vector.load %arg4[%c0_40, %c0_41, %c0_42] : memref<9x128x128xbf16, #tpu.memory_space<vmem>>, vector<1x128x128xbf16>
    %37 = vector.shape_cast %36 : vector<1x128x128xbf16> to vector<128x128xbf16>
    %cst_43 = arith.constant dense<0.000000e+00> : vector<128x128xf32>
    %38 = tpu.matmul %35, %37, %cst_43 {dimension_numbers = #tpu.dot_dimension_numbers<[1], [0], [0], [1], [0, 0, 1, 1], [], []>} : vector<128x128xbf16>, vector<128x128xbf16>, vector<128x128xf32> -> vector<128x128xf32>
    %39 = arith.addf %32, %38 : vector<128x128xf32>
    %c0_44 = arith.constant 0 : index
    %c1_45 = arith.constant 1 : index
    %c0_46 = arith.constant 0 : index
    %40 = vector.load %arg8[%c0_44, %c1_45, %c0_46] : memref<18x18x128xf32, #tpu.memory_space<vmem>>, vector<8x16x128xf32>
    %41 = vector.shape_cast %40 : vector<8x16x128xf32> to vector<128x128xf32>
    %42 = arith.truncf %41 : vector<128x128xf32> to vector<128x128xbf16>
    %c1_47 = arith.constant 1 : index
    %c0_48 = arith.constant 0 : index
    %c0_49 = arith.constant 0 : index
    %43 = vector.load %arg4[%c1_47, %c0_48, %c0_49] : memref<9x128x128xbf16, #tpu.memory_space<vmem>>, vector<1x128x128xbf16>
    %44 = vector.shape_cast %43 : vector<1x128x128xbf16> to vector<128x128xbf16>
    %cst_50 = arith.constant dense<0.000000e+00> : vector<128x128xf32>
    %45 = tpu.matmul %42, %44, %cst_50 {dimension_numbers = #tpu.dot_dimension_numbers<[1], [0], [0], [1], [0, 0, 1, 1], [], []>} : vector<128x128xbf16>, vector<128x128xbf16>, vector<128x128xf32> -> vector<128x128xf32>
    %46 = arith.addf %39, %45 : vector<128x128xf32>
    %c0_51 = arith.constant 0 : index
    %c2 = arith.constant 2 : index
    %c0_52 = arith.constant 0 : index
    %47 = vector.load %arg8[%c0_51, %c2, %c0_52] : memref<18x18x128xf32, #tpu.memory_space<vmem>>, vector<8x16x128xf32>
    %48 = vector.shape_cast %47 : vector<8x16x128xf32> to vector<128x128xf32>
    %49 = arith.truncf %48 : vector<128x128xf32> to vector<128x128xbf16>
    %c2_53 = arith.constant 2 : index
    %c0_54 = arith.constant 0 : index
    %c0_55 = arith.constant 0 : index
    %50 = vector.load %arg4[%c2_53, %c0_54, %c0_55] : memref<9x128x128xbf16, #tpu.memory_space<vmem>>, vector<1x128x128xbf16>
    %51 = vector.shape_cast %50 : vector<1x128x128xbf16> to vector<128x128xbf16>
    %cst_56 = arith.constant dense<0.000000e+00> : vector<128x128xf32>
    %52 = tpu.matmul %49, %51, %cst_56 {dimension_numbers = #tpu.dot_dimension_numbers<[1], [0], [0], [1], [0, 0, 1, 1], [], []>} : vector<128x128xbf16>, vector<128x128xbf16>, vector<128x128xf32> -> vector<128x128xf32>
    %53 = arith.addf %46, %52 : vector<128x128xf32>
    %c1_57 = arith.constant 1 : index
    %c0_58 = arith.constant 0 : index
    %c0_59 = arith.constant 0 : index
    %54 = vector.load %arg8[%c1_57, %c0_58, %c0_59] : memref<18x18x128xf32, #tpu.memory_space<vmem>>, vector<8x16x128xf32>
    %55 = vector.shape_cast %54 : vector<8x16x128xf32> to vector<128x128xf32>
    %56 = arith.truncf %55 : vector<128x128xf32> to vector<128x128xbf16>
    %c3 = arith.constant 3 : index
    %c0_60 = arith.constant 0 : index
    %c0_61 = arith.constant 0 : index
    %57 = vector.load %arg4[%c3, %c0_60, %c0_61] : memref<9x128x128xbf16, #tpu.memory_space<vmem>>, vector<1x128x128xbf16>
    %58 = vector.shape_cast %57 : vector<1x128x128xbf16> to vector<128x128xbf16>
    %cst_62 = arith.constant dense<0.000000e+00> : vector<128x128xf32>
    %59 = tpu.matmul %56, %58, %cst_62 {dimension_numbers = #tpu.dot_dimension_numbers<[1], [0], [0], [1], [0, 0, 1, 1], [], []>} : vector<128x128xbf16>, vector<128x128xbf16>, vector<128x128xf32> -> vector<128x128xf32>
    %60 = arith.addf %53, %59 : vector<128x128xf32>
    %c1_63 = arith.constant 1 : index
    %c1_64 = arith.constant 1 : index
    %c0_65 = arith.constant 0 : index
    %61 = vector.load %arg8[%c1_63, %c1_64, %c0_65] : memref<18x18x128xf32, #tpu.memory_space<vmem>>, vector<8x16x128xf32>
    %62 = vector.shape_cast %61 : vector<8x16x128xf32> to vector<128x128xf32>
    %63 = arith.truncf %62 : vector<128x128xf32> to vector<128x128xbf16>
    %c4 = arith.constant 4 : index
    %c0_66 = arith.constant 0 : index
    %c0_67 = arith.constant 0 : index
    %64 = vector.load %arg4[%c4, %c0_66, %c0_67] : memref<9x128x128xbf16, #tpu.memory_space<vmem>>, vector<1x128x128xbf16>
    %65 = vector.shape_cast %64 : vector<1x128x128xbf16> to vector<128x128xbf16>
    %cst_68 = arith.constant dense<0.000000e+00> : vector<128x128xf32>
    %66 = tpu.matmul %63, %65, %cst_68 {dimension_numbers = #tpu.dot_dimension_numbers<[1], [0], [0], [1], [0, 0, 1, 1], [], []>} : vector<128x128xbf16>, vector<128x128xbf16>, vector<128x128xf32> -> vector<128x128xf32>
    %67 = arith.addf %60, %66 : vector<128x128xf32>
    %c1_69 = arith.constant 1 : index
    %c2_70 = arith.constant 2 : index
    %c0_71 = arith.constant 0 : index
    %68 = vector.load %arg8[%c1_69, %c2_70, %c0_71] : memref<18x18x128xf32, #tpu.memory_space<vmem>>, vector<8x16x128xf32>
    %69 = vector.shape_cast %68 : vector<8x16x128xf32> to vector<128x128xf32>
    %70 = arith.truncf %69 : vector<128x128xf32> to vector<128x128xbf16>
    %c5 = arith.constant 5 : index
    %c0_72 = arith.constant 0 : index
    %c0_73 = arith.constant 0 : index
    %71 = vector.load %arg4[%c5, %c0_72, %c0_73] : memref<9x128x128xbf16, #tpu.memory_space<vmem>>, vector<1x128x128xbf16>
    %72 = vector.shape_cast %71 : vector<1x128x128xbf16> to vector<128x128xbf16>
    %cst_74 = arith.constant dense<0.000000e+00> : vector<128x128xf32>
    %73 = tpu.matmul %70, %72, %cst_74 {dimension_numbers = #tpu.dot_dimension_numbers<[1], [0], [0], [1], [0, 0, 1, 1], [], []>} : vector<128x128xbf16>, vector<128x128xbf16>, vector<128x128xf32> -> vector<128x128xf32>
    %74 = arith.addf %67, %73 : vector<128x128xf32>
    %c2_75 = arith.constant 2 : index
    %c0_76 = arith.constant 0 : index
    %c0_77 = arith.constant 0 : index
    %75 = vector.load %arg8[%c2_75, %c0_76, %c0_77] : memref<18x18x128xf32, #tpu.memory_space<vmem>>, vector<8x16x128xf32>
    %76 = vector.shape_cast %75 : vector<8x16x128xf32> to vector<128x128xf32>
    %77 = arith.truncf %76 : vector<128x128xf32> to vector<128x128xbf16>
    %c6 = arith.constant 6 : index
    %c0_78 = arith.constant 0 : index
    %c0_79 = arith.constant 0 : index
    %78 = vector.load %arg4[%c6, %c0_78, %c0_79] : memref<9x128x128xbf16, #tpu.memory_space<vmem>>, vector<1x128x128xbf16>
    %79 = vector.shape_cast %78 : vector<1x128x128xbf16> to vector<128x128xbf16>
    %cst_80 = arith.constant dense<0.000000e+00> : vector<128x128xf32>
    %80 = tpu.matmul %77, %79, %cst_80 {dimension_numbers = #tpu.dot_dimension_numbers<[1], [0], [0], [1], [0, 0, 1, 1], [], []>} : vector<128x128xbf16>, vector<128x128xbf16>, vector<128x128xf32> -> vector<128x128xf32>
    %81 = arith.addf %74, %80 : vector<128x128xf32>
    %c2_81 = arith.constant 2 : index
    %c1_82 = arith.constant 1 : index
    %c0_83 = arith.constant 0 : index
    %82 = vector.load %arg8[%c2_81, %c1_82, %c0_83] : memref<18x18x128xf32, #tpu.memory_space<vmem>>, vector<8x16x128xf32>
    %83 = vector.shape_cast %82 : vector<8x16x128xf32> to vector<128x128xf32>
    %84 = arith.truncf %83 : vector<128x128xf32> to vector<128x128xbf16>
    %c7 = arith.constant 7 : index
    %c0_84 = arith.constant 0 : index
    %c0_85 = arith.constant 0 : index
    %85 = vector.load %arg4[%c7, %c0_84, %c0_85] : memref<9x128x128xbf16, #tpu.memory_space<vmem>>, vector<1x128x128xbf16>
    %86 = vector.shape_cast %85 : vector<1x128x128xbf16> to vector<128x128xbf16>
    %cst_86 = arith.constant dense<0.000000e+00> : vector<128x128xf32>
    %87 = tpu.matmul %84, %86, %cst_86 {dimension_numbers = #tpu.dot_dimension_numbers<[1], [0], [0], [1], [0, 0, 1, 1], [], []>} : vector<128x128xbf16>, vector<128x128xbf16>, vector<128x128xf32> -> vector<128x128xf32>
    %88 = arith.addf %81, %87 : vector<128x128xf32>
    %c2_87 = arith.constant 2 : index
    %c2_88 = arith.constant 2 : index
    %c0_89 = arith.constant 0 : index
    %89 = vector.load %arg8[%c2_87, %c2_88, %c0_89] : memref<18x18x128xf32, #tpu.memory_space<vmem>>, vector<8x16x128xf32>
    %90 = vector.shape_cast %89 : vector<8x16x128xf32> to vector<128x128xf32>
    %91 = arith.truncf %90 : vector<128x128xf32> to vector<128x128xbf16>
    %c8 = arith.constant 8 : index
    %c0_90 = arith.constant 0 : index
    %c0_91 = arith.constant 0 : index
    %92 = vector.load %arg4[%c8, %c0_90, %c0_91] : memref<9x128x128xbf16, #tpu.memory_space<vmem>>, vector<1x128x128xbf16>
    %93 = vector.shape_cast %92 : vector<1x128x128xbf16> to vector<128x128xbf16>
    %cst_92 = arith.constant dense<0.000000e+00> : vector<128x128xf32>
    %94 = tpu.matmul %91, %93, %cst_92 {dimension_numbers = #tpu.dot_dimension_numbers<[1], [0], [0], [1], [0, 0, 1, 1], [], []>} : vector<128x128xbf16>, vector<128x128xbf16>, vector<128x128xf32> -> vector<128x128xf32>
    %95 = arith.addf %88, %94 : vector<128x128xf32>
    %cst_93 = arith.constant 0.000000e+00 : f32
    %96 = vector.broadcast %cst_93 : f32 to vector<128x128xf32>
    %97 = arith.maximumf %95, %96 : vector<128x128xf32>
    %c0_94 = arith.constant 0 : index
    %c0_95 = arith.constant 0 : index
    %c0_96 = arith.constant 0 : index
    %98 = vector.load %arg7[%c0_94, %c0_95, %c0_96] : memref<1x256x128xf32, #tpu.memory_space<vmem>>, vector<1x128x128xf32>
    %99 = vector.shape_cast %98 : vector<1x128x128xf32> to vector<128x128xf32>
    %100 = vector.shape_cast %97 : vector<128x128xf32> to vector<1x128x128xf32>
    tpu.vector_store %arg7[%c0_94, %c0_95, %c0_96], %100 {strides = array<i32>} : memref<1x256x128xf32, #tpu.memory_space<vmem>>, vector<1x128x128xf32>,
    %c0_97 = arith.constant 0 : index
    %c128_98 = arith.constant 128 : index
    %c0_99 = arith.constant 0 : index
    %101 = vector.load %arg6[%c0_97, %c128_98, %c0_99] : memref<1x256x128xf32, #tpu.memory_space<vmem>>, vector<1x128x128xf32>
    %102 = vector.shape_cast %101 : vector<1x128x128xf32> to vector<128x128xf32>
    %c0_100 = arith.constant 0 : index
    %c0_101 = arith.constant 0 : index
    %103 = vector.load %arg5[%c0_100, %c0_101] : memref<1x128xf32, #tpu.memory_space<vmem>>, vector<1x128xf32>
    %104 = vector.broadcast %103 : vector<1x128xf32> to vector<128x128xf32>
    %105 = arith.addf %102, %104 : vector<128x128xf32>
    %c8_102 = arith.constant 8 : index
    %c0_103 = arith.constant 0 : index
    %c0_104 = arith.constant 0 : index
    %106 = vector.load %arg8[%c8_102, %c0_103, %c0_104] : memref<18x18x128xf32, #tpu.memory_space<vmem>>, vector<8x16x128xf32>
    %107 = vector.shape_cast %106 : vector<8x16x128xf32> to vector<128x128xf32>
    %108 = arith.truncf %107 : vector<128x128xf32> to vector<128x128xbf16>
    %c0_105 = arith.constant 0 : index
    %c0_106 = arith.constant 0 : index
    %c0_107 = arith.constant 0 : index
    %109 = vector.load %arg4[%c0_105, %c0_106, %c0_107] : memref<9x128x128xbf16, #tpu.memory_space<vmem>>, vector<1x128x128xbf16>
    %110 = vector.shape_cast %109 : vector<1x128x128xbf16> to vector<128x128xbf16>
    %cst_108 = arith.constant dense<0.000000e+00> : vector<128x128xf32>
    %111 = tpu.matmul %108, %110, %cst_108 {dimension_numbers = #tpu.dot_dimension_numbers<[1], [0], [0], [1], [0, 0, 1, 1], [], []>} : vector<128x128xbf16>, vector<128x128xbf16>, vector<128x128xf32> -> vector<128x128xf32>
    %112 = arith.addf %105, %111 : vector<128x128xf32>
    %c8_109 = arith.constant 8 : index
    %c1_110 = arith.constant 1 : index
    %c0_111 = arith.constant 0 : index
    %113 = vector.load %arg8[%c8_109, %c1_110, %c0_111] : memref<18x18x128xf32, #tpu.memory_space<vmem>>, vector<8x16x128xf32>
    %114 = vector.shape_cast %113 : vector<8x16x128xf32> to vector<128x128xf32>
    %115 = arith.truncf %114 : vector<128x128xf32> to vector<128x128xbf16>
    %c1_112 = arith.constant 1 : index
    %c0_113 = arith.constant 0 : index
    %c0_114 = arith.constant 0 : index
    %116 = vector.load %arg4[%c1_112, %c0_113, %c0_114] : memref<9x128x128xbf16, #tpu.memory_space<vmem>>, vector<1x128x128xbf16>
    %117 = vector.shape_cast %116 : vector<1x128x128xbf16> to vector<128x128xbf16>
    %cst_115 = arith.constant dense<0.000000e+00> : vector<128x128xf32>
    %118 = tpu.matmul %115, %117, %cst_115 {dimension_numbers = #tpu.dot_dimension_numbers<[1], [0], [0], [1], [0, 0, 1, 1], [], []>} : vector<128x128xbf16>, vector<128x128xbf16>, vector<128x128xf32> -> vector<128x128xf32>
    %119 = arith.addf %112, %118 : vector<128x128xf32>
    %c8_116 = arith.constant 8 : index
    %c2_117 = arith.constant 2 : index
    %c0_118 = arith.constant 0 : index
    %120 = vector.load %arg8[%c8_116, %c2_117, %c0_118] : memref<18x18x128xf32, #tpu.memory_space<vmem>>, vector<8x16x128xf32>
    %121 = vector.shape_cast %120 : vector<8x16x128xf32> to vector<128x128xf32>
    %122 = arith.truncf %121 : vector<128x128xf32> to vector<128x128xbf16>
    %c2_119 = arith.constant 2 : index
    %c0_120 = arith.constant 0 : index
    %c0_121 = arith.constant 0 : index
    %123 = vector.load %arg4[%c2_119, %c0_120, %c0_121] : memref<9x128x128xbf16, #tpu.memory_space<vmem>>, vector<1x128x128xbf16>
    %124 = vector.shape_cast %123 : vector<1x128x128xbf16> to vector<128x128xbf16>
    %cst_122 = arith.constant dense<0.000000e+00> : vector<128x128xf32>
    %125 = tpu.matmul %122, %124, %cst_122 {dimension_numbers = #tpu.dot_dimension_numbers<[1], [0], [0], [1], [0, 0, 1, 1], [], []>} : vector<128x128xbf16>, vector<128x128xbf16>, vector<128x128xf32> -> vector<128x128xf32>
    %126 = arith.addf %119, %125 : vector<128x128xf32>
    %c9_123 = arith.constant 9 : index
    %c0_124 = arith.constant 0 : index
    %c0_125 = arith.constant 0 : index
    %127 = vector.load %arg8[%c9_123, %c0_124, %c0_125] : memref<18x18x128xf32, #tpu.memory_space<vmem>>, vector<8x16x128xf32>
    %128 = vector.shape_cast %127 : vector<8x16x128xf32> to vector<128x128xf32>
    %129 = arith.truncf %128 : vector<128x128xf32> to vector<128x128xbf16>
    %c3_126 = arith.constant 3 : index
    %c0_127 = arith.constant 0 : index
    %c0_128 = arith.constant 0 : index
    %130 = vector.load %arg4[%c3_126, %c0_127, %c0_128] : memref<9x128x128xbf16, #tpu.memory_space<vmem>>, vector<1x128x128xbf16>
    %131 = vector.shape_cast %130 : vector<1x128x128xbf16> to vector<128x128xbf16>
    %cst_129 = arith.constant dense<0.000000e+00> : vector<128x128xf32>
    %132 = tpu.matmul %129, %131, %cst_129 {dimension_numbers = #tpu.dot_dimension_numbers<[1], [0], [0], [1], [0, 0, 1, 1], [], []>} : vector<128x128xbf16>, vector<128x128xbf16>, vector<128x128xf32> -> vector<128x128xf32>
    %133 = arith.addf %126, %132 : vector<128x128xf32>
    %c9_130 = arith.constant 9 : index
    %c1_131 = arith.constant 1 : index
    %c0_132 = arith.constant 0 : index
    %134 = vector.load %arg8[%c9_130, %c1_131, %c0_132] : memref<18x18x128xf32, #tpu.memory_space<vmem>>, vector<8x16x128xf32>
    %135 = vector.shape_cast %134 : vector<8x16x128xf32> to vector<128x128xf32>
    %136 = arith.truncf %135 : vector<128x128xf32> to vector<128x128xbf16>
    %c4_133 = arith.constant 4 : index
    %c0_134 = arith.constant 0 : index
    %c0_135 = arith.constant 0 : index
    %137 = vector.load %arg4[%c4_133, %c0_134, %c0_135] : memref<9x128x128xbf16, #tpu.memory_space<vmem>>, vector<1x128x128xbf16>
    %138 = vector.shape_cast %137 : vector<1x128x128xbf16> to vector<128x128xbf16>
    %cst_136 = arith.constant dense<0.000000e+00> : vector<128x128xf32>
    %139 = tpu.matmul %136, %138, %cst_136 {dimension_numbers = #tpu.dot_dimension_numbers<[1], [0], [0], [1], [0, 0, 1, 1], [], []>} : vector<128x128xbf16>, vector<128x128xbf16>, vector<128x128xf32> -> vector<128x128xf32>
    %140 = arith.addf %133, %139 : vector<128x128xf32>
    %c9_137 = arith.constant 9 : index
    %c2_138 = arith.constant 2 : index
    %c0_139 = arith.constant 0 : index
    %141 = vector.load %arg8[%c9_137, %c2_138, %c0_139] : memref<18x18x128xf32, #tpu.memory_space<vmem>>, vector<8x16x128xf32>
    %142 = vector.shape_cast %141 : vector<8x16x128xf32> to vector<128x128xf32>
    %143 = arith.truncf %142 : vector<128x128xf32> to vector<128x128xbf16>
    %c5_140 = arith.constant 5 : index
    %c0_141 = arith.constant 0 : index
    %c0_142 = arith.constant 0 : index
    %144 = vector.load %arg4[%c5_140, %c0_141, %c0_142] : memref<9x128x128xbf16, #tpu.memory_space<vmem>>, vector<1x128x128xbf16>
    %145 = vector.shape_cast %144 : vector<1x128x128xbf16> to vector<128x128xbf16>
    %cst_143 = arith.constant dense<0.000000e+00> : vector<128x128xf32>
    %146 = tpu.matmul %143, %145, %cst_143 {dimension_numbers = #tpu.dot_dimension_numbers<[1], [0], [0], [1], [0, 0, 1, 1], [], []>} : vector<128x128xbf16>, vector<128x128xbf16>, vector<128x128xf32> -> vector<128x128xf32>
    %147 = arith.addf %140, %146 : vector<128x128xf32>
    %c10 = arith.constant 10 : index
    %c0_144 = arith.constant 0 : index
    %c0_145 = arith.constant 0 : index
    %148 = vector.load %arg8[%c10, %c0_144, %c0_145] : memref<18x18x128xf32, #tpu.memory_space<vmem>>, vector<8x16x128xf32>
    %149 = vector.shape_cast %148 : vector<8x16x128xf32> to vector<128x128xf32>
    %150 = arith.truncf %149 : vector<128x128xf32> to vector<128x128xbf16>
    %c6_146 = arith.constant 6 : index
    %c0_147 = arith.constant 0 : index
    %c0_148 = arith.constant 0 : index
    %151 = vector.load %arg4[%c6_146, %c0_147, %c0_148] : memref<9x128x128xbf16, #tpu.memory_space<vmem>>, vector<1x128x128xbf16>
    %152 = vector.shape_cast %151 : vector<1x128x128xbf16> to vector<128x128xbf16>
    %cst_149 = arith.constant dense<0.000000e+00> : vector<128x128xf32>
    %153 = tpu.matmul %150, %152, %cst_149 {dimension_numbers = #tpu.dot_dimension_numbers<[1], [0], [0], [1], [0, 0, 1, 1], [], []>} : vector<128x128xbf16>, vector<128x128xbf16>, vector<128x128xf32> -> vector<128x128xf32>
    %154 = arith.addf %147, %153 : vector<128x128xf32>
    %c10_150 = arith.constant 10 : index
    %c1_151 = arith.constant 1 : index
    %c0_152 = arith.constant 0 : index
    %155 = vector.load %arg8[%c10_150, %c1_151, %c0_152] : memref<18x18x128xf32, #tpu.memory_space<vmem>>, vector<8x16x128xf32>
    %156 = vector.shape_cast %155 : vector<8x16x128xf32> to vector<128x128xf32>
    %157 = arith.truncf %156 : vector<128x128xf32> to vector<128x128xbf16>
    %c7_153 = arith.constant 7 : index
    %c0_154 = arith.constant 0 : index
    %c0_155 = arith.constant 0 : index
    %158 = vector.load %arg4[%c7_153, %c0_154, %c0_155] : memref<9x128x128xbf16, #tpu.memory_space<vmem>>, vector<1x128x128xbf16>
    %159 = vector.shape_cast %158 : vector<1x128x128xbf16> to vector<128x128xbf16>
    %cst_156 = arith.constant dense<0.000000e+00> : vector<128x128xf32>
    %160 = tpu.matmul %157, %159, %cst_156 {dimension_numbers = #tpu.dot_dimension_numbers<[1], [0], [0], [1], [0, 0, 1, 1], [], []>} : vector<128x128xbf16>, vector<128x128xbf16>, vector<128x128xf32> -> vector<128x128xf32>
    %161 = arith.addf %154, %160 : vector<128x128xf32>
    %c10_157 = arith.constant 10 : index
    %c2_158 = arith.constant 2 : index
    %c0_159 = arith.constant 0 : index
    %162 = vector.load %arg8[%c10_157, %c2_158, %c0_159] : memref<18x18x128xf32, #tpu.memory_space<vmem>>, vector<8x16x128xf32>
    %163 = vector.shape_cast %162 : vector<8x16x128xf32> to vector<128x128xf32>
    %164 = arith.truncf %163 : vector<128x128xf32> to vector<128x128xbf16>
    %c8_160 = arith.constant 8 : index
    %c0_161 = arith.constant 0 : index
    %c0_162 = arith.constant 0 : index
    %165 = vector.load %arg4[%c8_160, %c0_161, %c0_162] : memref<9x128x128xbf16, #tpu.memory_space<vmem>>, vector<1x128x128xbf16>
    %166 = vector.shape_cast %165 : vector<1x128x128xbf16> to vector<128x128xbf16>
    %cst_163 = arith.constant dense<0.000000e+00> : vector<128x128xf32>
    %167 = tpu.matmul %164, %166, %cst_163 {dimension_numbers = #tpu.dot_dimension_numbers<[1], [0], [0], [1], [0, 0, 1, 1], [], []>} : vector<128x128xbf16>, vector<128x128xbf16>, vector<128x128xf32> -> vector<128x128xf32>
    %168 = arith.addf %161, %167 : vector<128x128xf32>
    %cst_164 = arith.constant 0.000000e+00 : f32
    %169 = vector.broadcast %cst_164 : f32 to vector<128x128xf32>
    %170 = arith.maximumf %168, %169 : vector<128x128xf32>
    %c0_165 = arith.constant 0 : index
    %c128_166 = arith.constant 128 : index
    %c0_167 = arith.constant 0 : index
    %171 = vector.load %arg7[%c0_165, %c128_166, %c0_167] : memref<1x256x128xf32, #tpu.memory_space<vmem>>, vector<1x128x128xf32>
    %172 = vector.shape_cast %171 : vector<1x128x128xf32> to vector<128x128xf32>
    %173 = vector.shape_cast %170 : vector<128x128xf32> to vector<1x128x128xf32>
    tpu.vector_store %arg7[%c0_165, %c128_166, %c0_167], %173 {strides = array<i32>} : memref<1x256x128xf32, #tpu.memory_space<vmem>>, vector<1x128x128xf32>,
    return
  }
  func.func @transform_0(%arg0: i32) -> (i32, i32, i32) {
    %c0_i32 = arith.constant 0 : i32
    %c0_i32_0 = arith.constant 0 : i32
    %c0_i32_1 = arith.constant 0 : i32
    return %arg0, %c0_i32, %c0_i32_0 : i32, i32, i32
  }
  func.func @transform_1(%arg0: i32) -> (i32, i32) {
    %c0_i32 = arith.constant 0 : i32
    %c0_i32_0 = arith.constant 0 : i32
    %c0_i32_1 = arith.constant 0 : i32
    return %c0_i32, %c0_i32_0 : i32, i32
  }
  func.func @transform_2(%arg0: i32) -> (i32, i32) {
    %c0_i32 = arith.constant 0 : i32
    %c0_i32_0 = arith.constant 0 : i32
    %c0_i32_1 = arith.constant 0 : i32
    return %c0_i32, %c0_i32_0 : i32, i32
  }
  func.func @transform_3(%arg0: i32) -> (i32, i32, i32) {
    %c0_i32 = arith.constant 0 : i32
    %c0_i32_0 = arith.constant 0 : i32
    %c0_i32_1 = arith.constant 0 : i32
    %c0_i32_2 = arith.constant 0 : i32
    return %c0_i32, %c0_i32_0, %c0_i32_1 : i32, i32, i32
  }
  func.func @transform_4(%arg0: i32) -> (i32, i32) {
    %c0_i32 = arith.constant 0 : i32
    %c0_i32_0 = arith.constant 0 : i32
    %c0_i32_1 = arith.constant 0 : i32
    return %c0_i32, %c0_i32_0 : i32, i32
  }
  func.func @transform_5(%arg0: i32) -> (i32, i32, i32) {
    %c0_i32 = arith.constant 0 : i32
    %c0_i32_0 = arith.constant 0 : i32
    %c0_i32_1 = arith.constant 0 : i32
    return %arg0, %c0_i32, %c0_i32_0 : i32, i32, i32
  }
  func.func @transform_6(%arg0: i32) -> (i32, i32, i32) {
    %c0_i32 = arith.constant 0 : i32
    %c0_i32_0 = arith.constant 0 : i32
    %c0_i32_1 = arith.constant 0 : i32
    return %arg0, %c0_i32, %c0_i32_0 : i32, i32, i32
  }
}

</mosaic_0001>

<bundles_post_ra>
// kernel: tpu_custom_call.1
= control target key start
LH: loop header
LB: loop body
LE: loop exit
PB: predicated region body
PF: predicated region fallthrough
CT: control target
= control target key end

     0   :  { %11 = vsyncpa [#allocation4], 0  ;;  %s7448_s0 = inlined_call_operand.hbm [shape: bf16[2,256,128], index: 0, kind: input, shape index: {}]   ;;  %s7449_s1 = inlined_call_operand.hbm [shape: bf16[128,128], index: 1, kind: input, shape index: {}]   ;;  %s7450_s2 = inlined_call_operand.vmem [shape: f32[1,128], index: 2, kind: input, shape index: {}]   ;;  %s7451_s3 = inlined_call_operand.hbm [shape: bf16[9,128,128], index: 3, kind: input, shape index: {}]   ;;  %s7452_s4 = inlined_call_operand.vmem [shape: f32[1,128], index: 4, kind: input, shape index: {}]   ;;  %s7453_s5 = inlined_call_operand.hbm [shape: f32[2,256,128], index: 5, kind: input, shape index: {}]   ;;  %s7454_s6 = inlined_call_operand.hbm [shape: f32[2,256,128], index: 6, kind: output, shape index: {}]  }
   0x1   :  { %13 = vsyncpa [#allocation4 + $0x1], 0 }
   0x2   :  { %14 = vsyncpa [#allocation7], 0 }
   0x3   :  { %15 = vsyncpa [#allocation10], 0 }
   0x4   :  { %17 = vsyncpa [#allocation10 + $0x1], 0 }
   0x5   :  { %18 = vsyncpa [#allocation5], 0 }
   0x6   :  { %20 = vsyncpa [#allocation5 + $0x1], 0  ;;  %s6761_s21 = smov 0   ;;  %s6763_s22 = smov 0  }
   0x7   :  { %s6765_s23 = smov 0   ;;  %s6767_s24 = smov 0  }
   0x8 LB: > { %s6782_s25 = sadd.s32 4294967295, %s6712_s24   ;;  %s4813_s26 = sadd.s32 4294967294, %s6712_s24   ;;  %s6712_s24 = sphi %s6767_s24, %s7482_s24   ;;  %s6708_s23 = sphi %s6765_s23, %s7486_s23   ;;  %s6704_s22 = sphi %s6763_s22, %s7485_s22   ;;  %s6700_s21 = sphi %s6761_s21, %s7484_s21  }
   0x9   : > { %s6786_s27 = sadd.s32 1, %s6712_s24   ;;  %s33_s28 = sadd.s32 1, %s6708_s23 }
   0xa   : > { %7462 = sst [smem:[#allocation16_spill]] %s6786_s27  ;;  %s30_s29 = ssub.s32 %s6712_s24, %s6786_s27 }
   0xb   : > { %p40_p0 = scmp.ne.s32.totalorder %s6708_s23, %s6704_s22  ;;  %p31_p1 = scmp.eq.s32.totalorder %s30_s29, 0 }
   0xc   : > { %p41_p2 = scmp.eq.s32.totalorder %s6712_s24, 0  ;;  %p46_p3 = scmp.ne.s32.totalorder %s6704_s22, %s6700_s21 }
   0xd   : > { %p7455_p4 = scmp.eq.s32.totalorder %s6782_s25, 0  ;;  %p180_p7 = scmp.eq.s32.totalorder %s6782_s25, 1 }
   0xe   : > { %s6798_s30 = scalar_select %p31_p1, %s6708_s23, %s33_s28  }
   0xf   : > { %p6800_p5 = por %p41_p2, %p40_p0  ;;  %p6806_p6 = por %p7455_p4, %p46_p3 }
  0x10   : > { %7463 = sst [smem:[#allocation17_spill]] %s6798_s30  ;;  %p186_p8 = scmp.eq.s32.totalorder %s4813_s26, 1 }
  0x11   : > { %s7464_s7 = scalar_select %p6800_p5, 1, 0 }
  0x12   : > { %s7465_s8 = scalar_select %p6806_p6, 1, 0 }
  0x13   : > { %p4814_p9 = scmp.ge.s32.totalorder %s6712_s24, 1  ;;  %p193_p10 = scmp.lt.s32.totalorder %s6712_s24, 3 }
  0x14   : > { %p6813_p11 = por %p180_p7, %p40_p0  ;;  %p6817_p12 = por %p186_p8, %p46_p3 }
  0x15   : > { %p6821_p13 = pnand %p4814_p9, %p193_p10  ;;  %s6714_s12 = smov [#allocation6]  }
  0x16   : > { %s7466_s9 = scalar_select %p6813_p11, 1, 0 }
  0x17   : > { %s7467_s10 = scalar_select %p6817_p12, 1, 0 }
  0x18   : > { %s7469_s11 = scalar_select %p6821_p13, 1, 0 }
  0x19   : > { %7468 = sst [smem:[#allocation18_spill]] %s7467_s10  ;;  %p6280_p1 = pneg %p6821_p13 }
  0x1a   : > { %s205_s13 = sshll.u32 %s6714_s12, 4  ;;  %s6715_s15 = smov [#allocation8]   ;;  %s206_s13 = int_to_ptr.vmem [resolvable:$true] %s205_s13 }
  0x1b   : > { %p6829_p2 = pnand %p6280_p1, %p7455_p4  ;;  %s221_s16 = sshll.u32 %s6715_s15, 4  ;;  %s222_s16 = int_to_ptr.vmem [resolvable:$true] %s221_s16 }
  0x1c   : > { %s6522_s19 = scalar_lea.hbm %s7449_s1, 1024 }
  0x1d   : > { %p6523_p7 = scmp.ne.s32.totalorder %s7449_s1, %s6522_s19  ;;  %p6524_p8 = pneg %p6829_p2 }
  0x1e   : > { %p6529_p1 = scmp.lt.u32.totalorder %s6522_s19, %s7449_s1 }
  0x1f   : > { %p6525_p9 = pnand %p6524_p8, %p6523_p7 }
  0x21   : > { %p6526_p10 = pneg %p6525_p9 }
  0x23   : > { %p6531_p0 = pnand %p6529_p1, %p6526_p10 }
  0x25   : > { %6534 = shalt.err (!%p6531_p0)
}
  0x26   : > { %s6535_s12 = scalar_lea.vmem %s206_s13, 1024  ;;  %p6543_p11 = scmp.lt.s32.totalorder %s206_s13, %s206_s13 }
  0x27   : > { %p6536_p4 = scmp.ne.s32.totalorder %s206_s13, %s6535_s12  ;;  %p6544_p6 = scmp.lt.s32.totalorder %s6535_s12, %s6535_s12 }
  0x29   : > { %p6538_p3 = pnand %p6536_p4, %p6524_p8  ;;  %p6545_p13 = por %p6544_p6, %p6543_p11 }
  0x2b   : > { %p6539_p12 = pneg %p6538_p3 }
  0x2d   : > { %p6546_p5 = pnand %p6545_p13, %p6539_p12 }
  0x2f   : > { %6549 = shalt.err (!%p6546_p5)
}
  0x30   : > { %s6716_s15 = smov 64   ;;  %s6717_s17 = smov 4  }
  0x31   : > { %6283 = dma.hbm_to_vmem [thread:$0]  (!%p6829_p2), %s7449_s1, 1024, %s206_s13, [#allocation7], %s6716_s15, %s6716_s15, %s6717_s17  }
  0x32   : > { %s6861_s20 = sand.u32 1, %s6708_s23   ;;  %s6550_s29 = scalar_lea.hbm %s7451_s3, 9216 }
  0x33   : > { %p6551_p4 = scmp.ne.s32.totalorder %s7451_s3, %s6550_s29  ;;  %p6557_p11 = scmp.lt.u32.totalorder %s6550_s29, %s7451_s3 }
  0x35   : > { %p6553_p5 = pnand %p6551_p4, %p6524_p8 }
  0x37   : > { %p6554_p6 = pneg %p6553_p5 }
  0x39   : > { %p6559_p12 = pnand %p6557_p11, %p6554_p6 }
  0x3b   : > { %6562 = shalt.err (!%p6559_p12)
}
  0x3c   : > { %s6563_s13 = scalar_lea.vmem %s222_s16, 9216  ;;  %p6571_p7 = scmp.lt.s32.totalorder %s222_s16, %s222_s16 }
  0x3d   : > { %p6564_p13 = scmp.ne.s32.totalorder %s222_s16, %s6563_s13  ;;  %p6572_p9 = scmp.lt.s32.totalorder %s6563_s13, %s6563_s13 }
  0x3f   : > { %p6566_p0 = pnand %p6564_p13, %p6524_p8  ;;  %p6573_p10 = por %p6572_p9, %p6571_p7 }
  0x41   : > { %p6567_p3 = pneg %p6566_p0 }
  0x43   : > { %p6574_p1 = pnand %p6573_p10, %p6567_p3 }
  0x45   : > { %6577 = shalt.err (!%p6574_p1)
}
  0x46   : > { %6286 = dma.hbm_to_vmem [thread:$0]  (!%p6829_p2), %s7451_s3, 9216, %s222_s16, [#allocation7], %s6716_s15, %s6716_s15, %s6717_s17  }
  0x47   : > { %s4818_s10 = sshll.u32 %s6861_s20, 7  ;;  %s5015_s18 = sshll.u32 %s6712_s24, 11 }
  0x48   : > { %s6891_s28 = scalar_lea.hbm %s7448_s0, %s5015_s18  ;;  %s242_s14 = scalar_lea.vmem [#allocation3], %s4818_s10 }
  0x49   : > { %s249_s29 = sshll.u32 %s242_s14, 4  ;;  %p7471_p8 = scmp.ne.s32.totalorder %s7464_s7, 0  ;;  %s6893_s29 = int_to_ptr.vmem [resolvable:$true] %s249_s29 }
  0x4a   : > { %p7472_p4 = scmp.lt.s32.totalorder %s6712_s24, 2  ;;  %s4821_s16 = sshll.u32 %s6861_s20, 8 }
  0x4b   : > { %s239_s13 = scalar_lea.sflag [#allocation4], %s6861_s20  ;;  %s6578_s27 = scalar_lea.hbm %s6891_s28, 2048 }
  0x4c   : > { %p6899_p5 = pnand %p7472_p4, %p7471_p8  ;;  %p6579_p2 = scmp.ne.s32.totalorder %s6891_s28, %s6578_s27 }
  0x4d   : > { %s6583_s7 = scalar_lea.hbm %s7448_s0, 4096  ;;  %p6584_p13 = scmp.lt.u32.totalorder %s6891_s28, %s7448_s0 }
  0x4e   : > { %p6580_p6 = pneg %p6899_p5  ;;  %p6585_p0 = scmp.lt.u32.totalorder %s6583_s7, %s6578_s27 }
  0x4f   : > { %p6587_p7 = scmp.lt.u32.totalorder %s6578_s27, %s6891_s28 }
  0x50   : > { %p6581_p11 = pnand %p6580_p6, %p6579_p2  ;;  %p6586_p3 = por %p6585_p0, %p6584_p13 }
  0x52   : > { %p6582_p12 = pneg %p6581_p11  ;;  %p6588_p9 = por %p6587_p7, %p6586_p3 }
  0x54   : > { %p6589_p10 = pnand %p6588_p9, %p6582_p12 }
  0x56   : > { %6592 = shalt.err (!%p6589_p10)
}
  0x57   : > { %s6593_s26 = scalar_lea.vmem %s6893_s29, 2048  ;;  %s6718_s14 = smov [#allocation3]  }
  0x58   : > { %p6594_p1 = scmp.ne.s32.totalorder %s6893_s29, %s6593_s26  ;;  %s6598_s30 = sshll.u32 %s6718_s14, 4  ;;  %s6599_s30 = int_to_ptr.vmem [resolvable:$false] %s6598_s30 }
  0x59   : > { %s6600_s10 = scalar_lea.vmem %s6599_s30, 4096  ;;  %p6601_p2 = scmp.lt.s32.totalorder %s6893_s29, %s6599_s30 }
  0x5a   : > { %p6596_p8 = pnand %p6594_p1, %p6580_p6  ;;  %p6602_p11 = scmp.lt.s32.totalorder %s6600_s10, %s6593_s26 }
  0x5c   : > { %p6597_p4 = pneg %p6596_p8  ;;  %p6603_p13 = por %p6602_p11, %p6601_p2 }
  0x5e   : > { %p6604_p0 = pnand %p6603_p13, %p6597_p4 }
  0x60   : > { %6607 = shalt.err (!%p6604_p0)
}
  0x61   : > { %6290 = dma.hbm_to_vmem [thread:$0]  (!%p6899_p5), %s6891_s28, 2048, %s6893_s29, %s239_s13, %s6716_s15, %s6716_s15, %s6717_s17  }
  0x62   : > { %s5016_s27 = sshll.u32 %s6712_s24, 12  ;;  %s263_s7 = scalar_lea.vmem [#allocation9], %s4821_s16 }
  0x63   : > { %s270_s18 = sshll.u32 %s263_s7, 4  ;;  %s6941_s14 = scalar_lea.hbm %s7453_s5, %s5016_s27  ;;  %s6943_s18 = int_to_ptr.vmem [resolvable:$true] %s270_s18 }
  0x64   : > { %s260_s30 = scalar_lea.sflag [#allocation10], %s6861_s20  ;;  %s6608_s10 = scalar_lea.hbm %s6941_s14, 4096 }
  0x65   : > { %p6609_p12 = scmp.ne.s32.totalorder %s6941_s14, %s6608_s10  ;;  %s6613_s28 = scalar_lea.hbm %s7453_s5, 8192 }
  0x66   : > { %p6614_p9 = scmp.lt.u32.totalorder %s6941_s14, %s7453_s5  ;;  %p6615_p10 = scmp.lt.u32.totalorder %s6613_s28, %s6608_s10 }
  0x67   : > { %p6611_p3 = pnand %p6609_p12, %p6580_p6  ;;  %p6617_p8 = scmp.lt.u32.totalorder %s6608_s10, %s6941_s14 }
  0x68   : > { %p6616_p1 = por %p6615_p10, %p6614_p9 }
  0x69   : > { %p6612_p7 = pneg %p6611_p3 }
  0x6a   : > { %p6618_p4 = por %p6617_p8, %p6616_p1 }
  0x6c   : > { %p6619_p2 = pnand %p6618_p4, %p6612_p7 }
  0x6e   : > { %6622 = shalt.err (!%p6619_p2)
}
  0x6f   : > { %s6623_s13 = scalar_lea.vmem %s6943_s18, 4096  ;;  %s6719_s27 = smov [#allocation9]  }
  0x70   : > { %p6624_p11 = scmp.ne.s32.totalorder %s6943_s18, %s6623_s13  ;;  %s6628_s7 = sshll.u32 %s6719_s27, 4  ;;  %s6629_s7 = int_to_ptr.vmem [resolvable:$false] %s6628_s7 }
  0x71   : > { %s6630_s19 = scalar_lea.vmem %s6629_s7, 8192  ;;  %p6631_p12 = scmp.lt.s32.totalorder %s6943_s18, %s6629_s7 }
  0x72   : > { %p6626_p13 = pnand %p6624_p11, %p6580_p6  ;;  %p6632_p3 = scmp.lt.s32.totalorder %s6630_s19, %s6623_s13 }
  0x74   : > { %p6627_p0 = pneg %p6626_p13  ;;  %p6633_p9 = por %p6632_p3, %p6631_p12 }
  0x76   : > { %p6634_p10 = pnand %p6633_p9, %p6627_p0 }
  0x78   : > { %6637 = shalt.err (!%p6634_p10)
}
  0x79   : > { %s6720_s26 = smov 128   ;;  %s6721_s10 = smov 8  }
  0x7a   : > { %6293 = dma.hbm_to_vmem [thread:$0]  (!%p6899_p5), %s6941_s14, 4096, %s6943_s18, %s260_s30, %s6720_s26, %s6720_s26, %s6721_s10  }
  0x7b   : > { %p7474_p6 = scmp.ne.s32.totalorder %s7469_s11, 0 }
  0x7c   : > { %s6974_s15 = sand.u32 (!%p7474_p6), 1, %s6704_s22   ;;  %p7475_p7 = scmp.ne.s32.totalorder (!%p7474_p6), %s7465_s8, 0 }
  0x7d   : > { %282 = sbr.rel (%p7474_p6) target bundleno = 939 (0x3ab), region = 44  ;;  %s4825_s17 = sshll.u32 (!%p7474_p6), %s6974_s15, 7 }
  0x7e   : > { %s285_s28 = scalar_lea.sflag (!%p7474_p6), [#allocation4], %s6974_s15  ;;  %s6978_s29 = scalar_lea.vmem (!%p7474_p6), [#allocation3], %s4825_s17 }
  0x84   : > { %6683 = dma.done.wait (%p7475_p7), %s285_s28, 2048  }
  0x85   : > { %6685 = vsyncadd (%p7475_p7), %s285_s28, 4294965248  ;;  %p7476_p5 = scmp.eq.s32.totalorder %s6782_s25, 0 }
  0x87   : > { %6687 = dma.done.wait (%p7476_p5), [#allocation7], 10240   ;;  %p7477_p1 = pmov %p7476_p5 }
  0x88   : > { %s4828_s11 = sshll.u32 %s6974_s15, 8  ;;  %s302_s20 = scalar_lea.sflag [#allocation10], %s6974_s15 }
  0x89   : > { %6689 = vsyncadd (%p7477_p1), [#allocation7], 4294957056  ;;  %s6992_s12 = scalar_lea.vmem [#allocation9], %s4828_s11 }
  0x8a   : > { %6691 = dma.done.wait (%p7475_p7), %s302_s20, 4096  }
  0x8b   : > { %6693 = vsyncadd (%p7475_p7), %s302_s20, 4294963200  ;;  %v6345_v0 = vld [vmem:[#allocation6] sm:$0xff]   ;;  %v6346_v1 = vld [vmem:[#allocation6 + $0x8] sm:$0xff]   ;;  %v6722_v38 = vmov 0.0   ;;  %s7310_s16 = scalar_lea.vmem [#allocation11], %s4828_s11  ;;  %s5017_s13 = sshll.u32 %s6782_s25, 12 }
  0x8c   : > { %5338 = vmatprep.subr.bf16.mxu0 %v6345_v0  ;;  %v6347_v2 = vld [vmem:[#allocation6 + $0x10] sm:$0xff]   ;;  %v6351_v3 = vld [vmem:[#allocation6] sm:$0xff]   ;;  %v6348_v4 = vld [vmem:[#allocation6 + $0x18] sm:$0xff]   ;;  %340 = vst [vmem:[#allocation2] sm:$0xff] %v6722_v38  ;;  %s4698_s27 = sshll.u32 %s7310_s16, 4  ;;  %s7399_s26 = scalar_lea.hbm %s7454_s6, %s5017_s13  ;;  %s7401_s27 = int_to_ptr.vmem [resolvable:$true] %s4698_s27 }
  0x8d   : > { %5339 = vmatpush3.bf16.msra.mxu0 %v6345_v0  ;;  %5370 = vmatprep.subr.bf16.mxu1 %v6351_v3  ;;  %v6353_v5 = vld [vmem:[#allocation6 + $0x8] sm:$0xff]   ;;  %v6355_v6 = vld [vmem:[#allocation6 + $0x10] sm:$0xff]   ;;  %v6356_v7 = vld [vmem:[%s6978_s29] sm:$0xff]   ;;  %341 = vst [vmem:[#allocation2 + $0x8] sm:$0xff] %v6722_v38  ;;  %s4685_s25 = scalar_lea.sflag [#allocation5], %s6974_s15  ;;  %s6638_s10 = scalar_lea.vmem %s7401_s27, 4096 }
  0x8e   : > { %5340 = vmatprep.subr.bf16.mxu0 %v6346_v1  ;;  %5371 = vmatpush3.bf16.msra.mxu1 %v6351_v3  ;;  %v6349_v8 = vld [vmem:[#allocation6 + $0x20] sm:$0xff]   ;;  %v6358_v9 = vld [vmem:[#allocation6 + $0x18] sm:$0xff]   ;;  %v6350_v10 = vld [vmem:[#allocation6 + $0x28] sm:$0xff]   ;;  %342 = vst [vmem:[#allocation2 + $0x10] sm:$0x3] %v6722_v38  ;;  %p6639_p8 = scmp.ne.s32.totalorder %s7401_s27, %s6638_s10  ;;  %p7478_p4 = scmp.ne.s32.totalorder %s7466_s9, 0 }
  0x8f   : > { %5372 = vmatprep.subr.bf16.mxu1 %v6353_v5  ;;  %5354 = vmatprep.mubr.bf16.mxu0 %v6356_v7  ;;  %v6359_v11 = vld [vmem:[#allocation6 + $0x20] sm:$0xff]   ;;  %v6352_v12 = vld [vmem:[#allocation6 + $0x30] sm:$0xff]   ;;  %v6362_v13 = vld [vmem:[#allocation6 + $0x28] sm:$0xff]   ;;  %344 = vst [vmem:[#allocation2 + $0x198] sm:$0xff] %v6722_v38  ;;  %s6723_s17 = smov [#allocation11]  }
  0x90   : > { %v6367_v14 = vld [vmem:[%s6978_s29 + $0x40] sm:$0xff]   ;;  %v6354_v15 = vld [vmem:[#allocation6 + $0x38] sm:$0xff]   ;;  %v6363_v16 = vld [vmem:[#allocation6 + $0x30] sm:$0xff]   ;;  %345 = vst [vmem:[#allocation2 + $0x1a0] sm:$0xff] %v6722_v38  ;;  %p6640_p2 = pnand %p6639_p8, %p7478_p4  ;;  %s6642_s28 = sshll.u32 %s6723_s17, 4  ;;  %s6643_s28 = int_to_ptr.vmem [resolvable:$false] %s6642_s28 }
  0x91   : > { %5341 = vmatpush3.bf16.msra.mxu0 %v6346_v1  ;;  %5386 = vmatprep.mubr.bf16.mxu1 %v6367_v14  ;;  %v6357_v17 = vld [vmem:[%s6978_s29 + $0x8] sm:$0xff]   ;;  %v6366_v18 = vld [vmem:[#allocation6 + $0x38] sm:$0xff]   ;;  %v6360_v19 = vld [vmem:[%s6978_s29 + $0x10] sm:$0xff]   ;;  %346 = vst [vmem:[#allocation2 + $0x1a8] sm:$0x3] %v6722_v38  ;;  %p6645_p13 = scmp.lt.s32.totalorder %s7401_s27, %s6643_s28 }
  0x92   : > { %5342 = vmatprep.subr.bf16.mxu0 %v6347_v2  ;;  %5373 = vmatpush3.bf16.msra.mxu1 %v6353_v5  ;;  %v6377_v20 = vld [vmem:[#allocation8] sm:$0xff]   ;;  %v6378_v21 = vld [vmem:[#allocation8 + $0x8] sm:$0xff]   ;;  %v6371_v23 = vld [vmem:[%s6978_s29 + $0x50] sm:$0xff]   ;;  %348 = vst [vmem:[#allocation2 + $0x18] sm:$0x1] %v6722_v38  ;;  %p6641_p11 = pneg %p6640_p2 }
  0x93   : > { %5374 = vmatprep.subr.bf16.mxu1 %v6355_v6  ;;  %v6368_v22 = vld [vmem:[%s6978_s29 + $0x48] sm:$0xff]   ;;  %v6379_v24 = vld [vmem:[#allocation8 + $0x10] sm:$0xff]   ;;  %v6361_v25 = vld [vmem:[%s6978_s29 + $0x18] sm:$0xff]   ;;  %349 = vst [vmem:[#allocation2 + $0x30] sm:$0x1] %v6722_v38 }
  0x94   : > { %v6364_v26 = vld [vmem:[%s6978_s29 + $0x20] sm:$0xff]   ;;  %v6380_v27 = vld [vmem:[#allocation8 + $0x18] sm:$0xff]   ;;  %v6365_v30 = vld [vmem:[%s6978_s29 + $0x28] sm:$0xff]   ;;  %350 = vst [vmem:[#allocation2 + $0x48] sm:$0x1] %v6722_v38 }
  0x95   : > { %5343 = vmatpush3.bf16.msra.mxu0 %v6347_v2  ;;  %v6372_v28 = vld [vmem:[%s6978_s29 + $0x58] sm:$0xff]   ;;  %v6373_v29 = vld [vmem:[%s6978_s29 + $0x60] sm:$0xff]   ;;  %v6369_v31 = vld [vmem:[%s6978_s29 + $0x30] sm:$0xff]   ;;  %351 = vst [vmem:[#allocation2 + $0x60] sm:$0x1] %v6722_v38 }
  0x96   : > { %5344 = vmatprep.subr.bf16.mxu0 %v6348_v4  ;;  %5375 = vmatpush3.bf16.msra.mxu1 %v6355_v6  ;;  %v6374_v32 = vld [vmem:[%s6978_s29 + $0x68] sm:$0xff]   ;;  %v6375_v33 = vld [vmem:[%s6978_s29 + $0x70] sm:$0xff]   ;;  %v6370_v34 = vld [vmem:[%s6978_s29 + $0x38] sm:$0xff]   ;;  %352 = vst [vmem:[#allocation2 + $0x78] sm:$0x1] %v6722_v38 }
  0x97   : > { %5376 = vmatprep.subr.bf16.mxu1 %v6358_v9  ;;  %v6376_v35 = vld [vmem:[%s6978_s29 + $0x78] sm:$0xff]   ;;  %v6381_v36 = vld [vmem:[#allocation8 + $0x20] sm:$0xff]   ;;  %v6382_v37 = vld [vmem:[#allocation8 + $0x28] sm:$0xff]   ;;  %353 = vst [vmem:[#allocation2 + $0x90] sm:$0x1] %v6722_v38  ;;  %s6644_s29 = scalar_lea.vmem %s6643_s28, 8192 }
  0x98   : > { %354 = vst [vmem:[#allocation2 + $0xa8] sm:$0x1] %v6722_v38  ;;  %355 = vst [vmem:[#allocation2 + $0xc0] sm:$0x1] %v6722_v38  ;;  %v6383_v39 = vld [vmem:[#allocation8] sm:$0xff]   ;;  %v6384_v40 = vld [vmem:[#allocation8 + $0x30] sm:$0xff]   ;;  %p6646_p0 = scmp.lt.s32.totalorder %s6644_s29, %s6638_s10 }
  0x99   : > { %5345 = vmatpush3.bf16.msra.mxu0 %v6348_v4  ;;  %356 = vst [vmem:[#allocation2 + $0xd8] sm:$0x1] %v6722_v38  ;;  %357 = vst [vmem:[#allocation2 + $0xf0] sm:$0x1] %v6722_v38  ;;  %v6385_v41 = vld [vmem:[#allocation8 + $0x8] sm:$0xff]   ;;  %v6386_v42 = vld [vmem:[#allocation8 + $0x38] sm:$0xff]  }
  0x9a   : > { %5346 = vmatprep.subr.bf16.mxu0 %v6349_v8  ;;  %5377 = vmatpush3.bf16.msra.mxu1 %v6358_v9  ;;  %358 = vst [vmem:[#allocation2 + $0x108] sm:$0x1] %v6722_v38  ;;  %359 = vst [vmem:[#allocation2 + $0x120] sm:$0x1] %v6722_v38  ;;  %v6387_v45 = vld [vmem:[#allocation8 + $0x10] sm:$0xff]   ;;  %v7014_v46 = vld [vmem:[#allocation8 + $0x40] sm:$0xff]   ;;  %p6647_p12 = por %p6646_p0, %p6645_p13 }
  0x9b   : > { %5378 = vmatprep.subr.bf16.mxu1 %v6359_v11  ;;  %360 = vst [vmem:[#allocation2 + $0x138] sm:$0x1] %v6722_v38  ;;  %361 = vst [vmem:[#allocation2 + $0x150] sm:$0x1] %v6722_v38  ;;  %v6389_v47 = vld [vmem:[#allocation8 + $0x18] sm:$0xff]   ;;  %v6391_v48 = vld [vmem:[#allocation8 + $0x20] sm:$0xff]  }
  0x9c   : > { %362 = vst [vmem:[#allocation2 + $0x168] sm:$0x1] %v6722_v38  ;;  %363 = vst [vmem:[#allocation2 + $0x180] sm:$0x1] %v6722_v38  ;;  %v6393_v49 = vld [vmem:[#allocation8 + $0x28] sm:$0xff]   ;;  %v6395_v50 = vld [vmem:[#allocation8 + $0x30] sm:$0xff]   ;;  %p6648_p3 = pnand %p6647_p12, %p6641_p11 }
  0x9d   : > { %5347 = vmatpush3.bf16.msra.mxu0 %v6349_v8  ;;  %366 = vst [vmem:[#allocation2 + $0x29] sm:$0x1] %v6722_v38  ;;  %367 = vst [vmem:[#allocation2 + $0x41] sm:$0x1] %v6722_v38  ;;  %v6397_v51 = vld [vmem:[#allocation8 + $0x38] sm:$0xff]   ;;  %v7017_v52 = vld [vmem:[#allocation8 + $0x40] sm:$0xff]  }
  0x9e   : > { %5348 = vmatprep.subr.bf16.mxu0 %v6350_v10  ;;  %5379 = vmatpush3.bf16.msra.mxu1 %v6359_v11  ;;  %368 = vst [vmem:[#allocation2 + $0x59] sm:$0x1] %v6722_v38  ;;  %369 = vst [vmem:[#allocation2 + $0x71] sm:$0x1] %v6722_v38  ;;  %v7023_v53 = vld [vmem:[%s7450_s2] ss:$0 sm:$0xff] }
  0x9f   : > { %5380 = vmatprep.subr.bf16.mxu1 %v6362_v13  ;;  %370 = vst [vmem:[#allocation2 + $0x89] sm:$0x1] %v6722_v38  ;;  %371 = vst [vmem:[#allocation2 + $0xa1] sm:$0x1] %v6722_v38 }
  0xa0   : > { %372 = vst [vmem:[#allocation2 + $0xb9] sm:$0x1] %v6722_v38  ;;  %373 = vst [vmem:[#allocation2 + $0xd1] sm:$0x1] %v6722_v38 }
  0xa1   : > { %5349 = vmatpush3.bf16.msra.mxu0 %v6350_v10  ;;  %374 = vst [vmem:[#allocation2 + $0xe9] sm:$0x1] %v6722_v38  ;;  %375 = vst [vmem:[#allocation2 + $0x101] sm:$0x1] %v6722_v38 }
  0xa2   : > { %5350 = vmatprep.subr.bf16.mxu0 %v6352_v12  ;;  %5381 = vmatpush3.bf16.msra.mxu1 %v6362_v13  ;;  %376 = vst [vmem:[#allocation2 + $0x119] sm:$0x1] %v6722_v38  ;;  %377 = vst [vmem:[#allocation2 + $0x131] sm:$0x1] %v6722_v38 }
  0xa3   : > { %5382 = vmatprep.subr.bf16.mxu1 %v6363_v16  ;;  %378 = vst [vmem:[#allocation2 + $0x149] sm:$0x1] %v6722_v38  ;;  %379 = vst [vmem:[#allocation2 + $0x161] sm:$0x1] %v6722_v38 }
  0xa4   : > { %380 = vst [vmem:[#allocation2 + $0x179] sm:$0x1] %v6722_v38  ;;  %381 = vst [vmem:[#allocation2 + $0x191] sm:$0x1] %v6722_v38 }
  0xa5   : > { %5351 = vmatpush3.bf16.msra.mxu0 %v6352_v12  ;;  %347 = vst [vmem:[#allocation2] sm:$0x1] %v6722_v38  ;;  %364 = vst [vmem:[#allocation2 + $0x198] sm:$0x1] %v6722_v38 }
  0xa6   : > { %5352 = vmatprep.subr.bf16.mxu0 %v6354_v15  ;;  %5383 = vmatpush3.bf16.msra.mxu1 %v6363_v16  ;;  %365 = vst [vmem:[#allocation2 + $0x11] sm:$0x1] %v6722_v38  ;;  %382 = vst [vmem:[#allocation2 + $0x1a9] sm:$0x1] %v6722_v38 }
  0xa7   : > { %5384 = vmatprep.subr.bf16.mxu1 %v6366_v18 }
  0xa9   : > { %5353 = vmatpush3.bf16.msra.mxu0 %v6354_v15 }
  0xaa   : > { %5402 = vmatprep.subr.bf16.mxu0 %v6377_v20  ;;  %5385 = vmatpush3.bf16.msra.mxu1 %v6366_v18 }
  0xab   : > { %5690 = vmatprep.subr.bf16.mxu1 %v6383_v39 }
  0xac   : > { %5355 = vmatmul.mubr.bf16.vlgmr.msra.gmra.mrb[0].mxu0 %v6357_v17  ;;  %v952_v43 = vld [vmem:[#allocation2] sm:$0xff] }
  0xad   : > { %5358 = vmatprep.mubr.bf16.mxu0 %v6360_v19  ;;  %5403 = vmatpush3.bf16.msra.mxu0 %v6377_v20  ;;  %v968_v44 = vpack.c.bf16 %v6722_v38, %v952_v43 }
  0xae   : > { %5404 = vmatprep.subr.bf16.mxu0 %v6378_v21  ;;  %5387 = vmatmul.mubr.bf16.vlgmr.msra.gmra.mrb[0].mxu1 %v6368_v22 }
  0xaf   : > { %5390 = vmatprep.mubr.bf16.mxu1 %v6371_v23  ;;  %5691 = vmatpush3.bf16.msra.mxu1 %v6383_v39 }
  0xb0   : > { %5692 = vmatprep.subr.bf16.mxu1 %v6385_v41 }
  0xb1   : > { %5405 = vmatpush3.bf16.msra.mxu0 %v6378_v21 }
  0xb2   : > { %5406 = vmatprep.subr.bf16.mxu0 %v6379_v24 }
  0xb3   : > { %5693 = vmatpush3.bf16.msra.mxu1 %v6385_v41 }
  0xb4   : > { %5359 = vmatmul.mubr.bf16.gmra.mrb[4].mxu0 %v6361_v25  ;;  %5694 = vmatprep.subr.bf16.mxu1 %v6387_v45 }
  0xb5   : > { %5362 = vmatprep.mubr.bf16.mxu0 %v6364_v26  ;;  %5407 = vmatpush3.bf16.msra.mxu0 %v6379_v24 }
  0xb6   : > { %5408 = vmatprep.subr.bf16.mxu0 %v6380_v27  ;;  %5391 = vmatmul.mubr.bf16.gmra.mrb[4].mxu1 %v6372_v28 }
  0xb7   : > { %5394 = vmatprep.mubr.bf16.mxu1 %v6373_v29  ;;  %5695 = vmatpush3.bf16.msra.mxu1 %v6387_v45 }
  0xb8   : > { %5696 = vmatprep.subr.bf16.mxu1 %v6389_v47 }
  0xb9   : > { %5409 = vmatpush3.bf16.msra.mxu0 %v6380_v27 }
  0xba   : > { %5410 = vmatprep.subr.bf16.mxu0 %v6381_v36 }
  0xbb   : > { %5697 = vmatpush3.bf16.msra.mxu1 %v6389_v47 }
  0xbc   : > { %5363 = vmatmul.mubr.bf16.gmra.mrb[8].mxu0 %v6365_v30  ;;  %5698 = vmatprep.subr.bf16.mxu1 %v6391_v48 }
  0xbd   : > { %5366 = vmatprep.mubr.bf16.mxu0 %v6369_v31  ;;  %5411 = vmatpush3.bf16.msra.mxu0 %v6381_v36 }
  0xbe   : > { %5395 = vmatmul.mubr.bf16.gmra.mrb[8].mxu1 %v6374_v32  ;;  %5412 = vmatprep.subr.bf16.mxu0 %v6382_v37 }
  0xbf   : > { %5398 = vmatprep.mubr.bf16.mxu1 %v6375_v33  ;;  %5699 = vmatpush3.bf16.msra.mxu1 %v6391_v48 }
  0xc0   : > { %5700 = vmatprep.subr.bf16.mxu1 %v6393_v49 }
  0xc1   : > { %5413 = vmatpush3.bf16.msra.mxu0 %v6382_v37 }
  0xc2   : > { %5414 = vmatprep.subr.bf16.mxu0 %v6384_v40 }
  0xc3   : > { %5701 = vmatpush3.bf16.msra.mxu1 %v6393_v49 }
  0xc4   : > { %5367 = vmatmul.mubr.bf16.gmra.mrb[12].mxu0 %v6370_v34  ;;  %5702 = vmatprep.subr.bf16.mxu1 %v6395_v50 }
  0xc5   : > { %5415 = vmatpush3.bf16.msra.mxu0 %v6384_v40  ;;  %5418 = vmatprep.mubr.bf16.mxu0 %v968_v44  ;;  %v6390_v40 = vld [vmem:[#allocation8 + $0x48] sm:$0xff]  }
  0xc6   : > { %5399 = vmatmul.mubr.bf16.gmra.mrb[12].mxu1 %v6376_v35  ;;  %5416 = vmatprep.subr.bf16.mxu0 %v6386_v42 }
  0xc7   : > { %5703 = vmatpush3.bf16.msra.mxu1 %v6395_v50 }
  0xc8   : > { %5704 = vmatprep.subr.bf16.mxu1 %v6397_v51 }
  0xc9   : > { %5417 = vmatpush3.bf16.msra.mxu0 %v6386_v42 }
  0xca   : > { %5434 = vmatprep.subr.bf16.mxu0 %v7014_v46 }
  0xcb   : > { %5705 = vmatpush3.bf16.msra.mxu1 %v6397_v51 }
  0xcc   : > { %5722 = vmatprep.subr.bf16.mxu1 %v7017_v52 }
 0x17f   : > { %v5356_v54 = vpop.f32.mrb[0].mxu0 }
 0x180   : > { %v561_v55 = vadd.f32 %v5356_v54, %v7023_v53  ;;  %v552_v56 = vpop.f32.mrb[1].mxu0 }
 0x181   : > { %v553_v57 = vadd.f32 %v7023_v53, %v552_v56  ;;  %v5357_v58 = vpop.f32.mrb[2].mxu0  ;;  %v5388_v2 = vpop.f32.mrb[0].mxu1 }
 0x182   : > { %v617_v59 = vmax.f32 %v561_v55, 0.0  ;;  %v564_v60 = vadd.f32 %v5357_v58, %v7023_v53  ;;  %v555_v61 = vpop.f32.mrb[3].mxu0  ;;  %v826_v3 = vadd.f32 %v5388_v2, %v7023_v53  ;;  %v817_v4 = vpop.f32.mrb[1].mxu1 }
 0x183   : > { %v615_v62 = vmax.f32 %v553_v57, 0.0  ;;  %v556_v63 = vadd.f32 %v7023_v53, %v555_v61  ;;  %v818_v7 = vadd.f32 %v7023_v53, %v817_v4  ;;  %v5389_v8 = vpop.f32.mrb[2].mxu1 }
 0x184   : > { %634 = vst [vmem:[#allocation2 + $0x31] sm:$0xff] %v617_v59  ;;  %v618_v0 = vmax.f32 %v564_v60, 0.0  ;;  %v882_v12 = vmax.f32 %v826_v3, 0.0  ;;  %v829_v13 = vadd.f32 %v5389_v8, %v7023_v53  ;;  %v820_v14 = vpop.f32.mrb[3].mxu1 }
 0x185   : > { %632 = vst [vmem:[#allocation2 + $0x19] sm:$0xff] %v615_v62  ;;  %v616_v1 = vmax.f32 %v556_v63, 0.0  ;;  %v880_v17 = vmax.f32 %v818_v7, 0.0  ;;  %v821_v18 = vadd.f32 %v7023_v53, %v820_v14  ;;  %v6392_v63 = vld [vmem:[#allocation8 + $0x50] sm:$0xff]  }
 0x186   : > { %635 = vst [vmem:[#allocation2 + $0x39] sm:$0xff] %v618_v0  ;;  %v7030_v5 = vpack.c.bf16 %v618_v0, %v617_v59  ;;  %899 = vst [vmem:[#allocation2 + $0xf1] sm:$0xff] %v882_v12  ;;  %v883_v22 = vmax.f32 %v829_v13, 0.0 }
 0x187   : > { %633 = vst [vmem:[#allocation2 + $0x21] sm:$0xff] %v616_v1  ;;  %v5360_v6 = vpop.f32.mrb[4].mxu0  ;;  %v7033_v9 = vpack.c.bf16 %v616_v1, %v615_v62  ;;  %897 = vst [vmem:[#allocation2 + $0xd9] sm:$0xff] %v880_v17  ;;  %v881_v25 = vmax.f32 %v821_v18, 0.0 }
 0x188   : > { %v577_v10 = vadd.f32 %v5360_v6, %v7023_v53  ;;  %v568_v11 = vpop.f32.mrb[5].mxu0  ;;  %900 = vst [vmem:[#allocation2 + $0xf9] sm:$0xff] %v883_v22  ;;  %v7041_v27 = vpack.c.bf16 %v883_v22, %v882_v12 }
 0x189   : > { %v569_v15 = vadd.f32 %v7023_v53, %v568_v11  ;;  %v5361_v16 = vpop.f32.mrb[6].mxu0  ;;  %898 = vst [vmem:[#allocation2 + $0xe1] sm:$0xff] %v881_v25  ;;  %v5392_v30 = vpop.f32.mrb[4].mxu1  ;;  %v7043_v31 = vpack.c.bf16 %v881_v25, %v880_v17 }
 0x18a   : > { %v621_v19 = vmax.f32 %v577_v10, 0.0  ;;  %v580_v20 = vadd.f32 %v5361_v16, %v7023_v53  ;;  %v571_v21 = vpop.f32.mrb[7].mxu0  ;;  %v842_v34 = vadd.f32 %v5392_v30, %v7023_v53  ;;  %v833_v35 = vpop.f32.mrb[5].mxu1  ;;  %v6394_v16 = vld [vmem:[#allocation8 + $0x58] sm:$0xff]  }
 0x18b   : > { %v619_v23 = vmax.f32 %v569_v15, 0.0  ;;  %v572_v24 = vadd.f32 %v7023_v53, %v571_v21  ;;  %v956_v39 = vld [vmem:[#allocation2 + $0x30] sm:$0xff]  ;;  %v834_v41 = vadd.f32 %v7023_v53, %v833_v35  ;;  %v5393_v42 = vpop.f32.mrb[6].mxu1 }
 0x18c   : > { %638 = vst [vmem:[#allocation2 + $0x61] sm:$0xff] %v621_v19  ;;  %v622_v26 = vmax.f32 %v580_v20, 0.0  ;;  %v954_v32 = vld [vmem:[#allocation2 + $0x18] sm:$0xff]  ;;  %v886_v48 = vmax.f32 %v842_v34, 0.0  ;;  %v845_v49 = vadd.f32 %v5393_v42, %v7023_v53  ;;  %v836_v50 = vpop.f32.mrb[7].mxu1 }
 0x18d   : > { %636 = vst [vmem:[#allocation2 + $0x49] sm:$0xff] %v619_v23  ;;  %v620_v28 = vmax.f32 %v572_v24, 0.0  ;;  %v957_v29 = vld [vmem:[#allocation2 + $0x38] sm:$0xff]  ;;  %v884_v55 = vmax.f32 %v834_v41, 0.0  ;;  %v837_v56 = vadd.f32 %v7023_v53, %v836_v50 }
 0x18e   : > { %639 = vst [vmem:[#allocation2 + $0x69] sm:$0xff] %v622_v26  ;;  %v955_v33 = vld [vmem:[#allocation2 + $0x20] sm:$0xff]  ;;  %v7046_v36 = vpack.c.bf16 %v622_v26, %v621_v19  ;;  %v7054_v47 = vpack.c.bf16 %v957_v29, %v956_v39  ;;  %903 = vst [vmem:[#allocation2 + $0x121] sm:$0xff] %v886_v48  ;;  %v887_v60 = vmax.f32 %v845_v49, 0.0 }
 0x18f   : > { %637 = vst [vmem:[#allocation2 + $0x51] sm:$0xff] %v620_v28  ;;  %v5364_v37 = vpop.f32.mrb[8].mxu0  ;;  %v7048_v38 = vpack.c.bf16 %v955_v33, %v954_v32  ;;  %v7051_v43 = vpack.c.bf16 %v620_v28, %v619_v23  ;;  %901 = vst [vmem:[#allocation2 + $0x109] sm:$0xff] %v884_v55  ;;  %v885_v0 = vmax.f32 %v837_v56, 0.0 }
 0x190   : > { %v593_v44 = vadd.f32 %v5364_v37, %v7023_v53  ;;  %v584_v45 = vpop.f32.mrb[9].mxu0  ;;  %904 = vst [vmem:[#allocation2 + $0x129] sm:$0xff] %v887_v60  ;;  %v7064_v2 = vpack.c.bf16 %v887_v60, %v886_v48  ;;  %v6398_v60 = vld [vmem:[#allocation8 + $0x68] sm:$0xff]  }
 0x191   : > { %v585_v51 = vadd.f32 %v7023_v53, %v584_v45  ;;  %v5365_v54 = vpop.f32.mrb[10].mxu0  ;;  %5419 = vmatmul.mubr.bf16.vlgmr.msra.gmra.mrb[16].mxu0 %v7048_v38  ;;  %902 = vst [vmem:[#allocation2 + $0x111] sm:$0xff] %v885_v0  ;;  %v5396_v6 = vpop.f32.mrb[8].mxu1 }
 0x192   : > { %v625_v57 = vmax.f32 %v593_v44, 0.0  ;;  %v596_v58 = vadd.f32 %v5365_v54, %v7023_v53  ;;  %v587_v59 = vpop.f32.mrb[11].mxu0  ;;  %5422 = vmatprep.mubr.bf16.mxu0 %v7054_v47  ;;  %5435 = vmatpush3.bf16.msra.mxu0 %v7014_v46  ;;  %v7066_v46 = vpack.c.bf16 %v885_v0, %v884_v55  ;;  %v858_v10 = vadd.f32 %v5396_v6, %v7023_v53  ;;  %v849_v11 = vpop.f32.mrb[9].mxu1 }
 0x193   : > { %v623_v61 = vmax.f32 %v585_v51, 0.0  ;;  %v588_v62 = vadd.f32 %v7023_v53, %v587_v59  ;;  %5436 = vmatprep.subr.bf16.mxu0 %v6390_v40  ;;  %v960_v15 = vld [vmem:[#allocation2 + $0x60] sm:$0xff]  ;;  %v850_v17 = vadd.f32 %v7023_v53, %v849_v11  ;;  %v5397_v18 = vpop.f32.mrb[10].mxu1 }
 0x194   : > { %642 = vst [vmem:[#allocation2 + $0x91] sm:$0xff] %v625_v57  ;;  %v626_v1 = vmax.f32 %v596_v58, 0.0  ;;  %v958_v7 = vld [vmem:[#allocation2 + $0x48] sm:$0xff]  ;;  %v890_v23 = vmax.f32 %v858_v10, 0.0  ;;  %v861_v24 = vadd.f32 %v5397_v18, %v7023_v53  ;;  %v852_v25 = vpop.f32.mrb[11].mxu1  ;;  %v6400_v10 = vld [vmem:[#allocation8 + $0x70] sm:$0xff]  }
 0x195   : > { %640 = vst [vmem:[#allocation2 + $0x79] sm:$0xff] %v623_v61  ;;  %v624_v3 = vmax.f32 %v588_v62, 0.0  ;;  %v961_v4 = vld [vmem:[#allocation2 + $0x68] sm:$0xff]  ;;  %v888_v29 = vmax.f32 %v850_v17, 0.0  ;;  %v853_v30 = vadd.f32 %v7023_v53, %v852_v25 }
 0x196   : > { %643 = vst [vmem:[#allocation2 + $0x99] sm:$0xff] %v626_v1  ;;  %5437 = vmatpush3.bf16.msra.mxu0 %v6390_v40  ;;  %v959_v8 = vld [vmem:[#allocation2 + $0x50] sm:$0xff]  ;;  %v7069_v12 = vpack.c.bf16 %v626_v1, %v625_v57  ;;  %v7077_v22 = vpack.c.bf16 %v961_v4, %v960_v15  ;;  %907 = vst [vmem:[#allocation2 + $0x151] sm:$0xff] %v890_v23  ;;  %v891_v35 = vmax.f32 %v861_v24, 0.0  ;;  %v2844_v15 = vld [vmem:[#allocation2 + $0xd8] sm:$0xff] }
 0x197   : > { %641 = vst [vmem:[#allocation2 + $0x81] sm:$0xff] %v624_v3  ;;  %v5368_v13 = vpop.f32.mrb[12].mxu0  ;;  %v7071_v14 = vpack.c.bf16 %v959_v8, %v958_v7  ;;  %5438 = vmatprep.subr.bf16.mxu0 %v6392_v63  ;;  %v7074_v19 = vpack.c.bf16 %v624_v3, %v623_v61  ;;  %v6396_v40 = vld [vmem:[#allocation8 + $0x60] sm:$0xff]   ;;  %905 = vst [vmem:[#allocation2 + $0x139] sm:$0xff] %v888_v29  ;;  %v889_v41 = vmax.f32 %v853_v30, 0.0  ;;  %v6401_v30 = vld [vmem:[#allocation8 + $0x48] sm:$0xff]  }
 0x198   : > { %v609_v20 = vadd.f32 %v5368_v13, %v7023_v53  ;;  %v600_v21 = vpop.f32.mrb[13].mxu0  ;;  %908 = vst [vmem:[#allocation2 + $0x159] sm:$0xff] %v891_v35  ;;  %v7086_v44 = vpack.c.bf16 %v891_v35, %v890_v23  ;;  %v1153_v13 = vld [vmem:[#allocation2 + $0x1] sm:$0xff]  ;;  %v1154_v17 = vld [vmem:[#allocation2 + $0x9] sm:$0xff] }
 0x199   : > { %v601_v26 = vadd.f32 %v7023_v53, %v600_v21  ;;  %v5369_v28 = vpop.f32.mrb[14].mxu0  ;;  %5423 = vmatmul.mubr.bf16.gmra.mrb[20].mxu0 %v7071_v14  ;;  %906 = vst [vmem:[#allocation2 + $0x141] sm:$0xff] %v889_v41  ;;  %v5400_v49 = vpop.f32.mrb[12].mxu1  ;;  %v7088_v50 = vpack.c.bf16 %v889_v41, %v888_v29  ;;  %v2846_v21 = vld [vmem:[#allocation2 + $0xf0] sm:$0xff]  ;;  %v6403_v35 = vld [vmem:[#allocation8 + $0x50] sm:$0xff]  }
 0x19a   : > { %v629_v32 = vmax.f32 %v609_v20, 0.0  ;;  %v612_v33 = vadd.f32 %v5369_v28, %v7023_v53  ;;  %v603_v34 = vpop.f32.mrb[15].mxu0  ;;  %5426 = vmatprep.mubr.bf16.mxu0 %v7077_v22  ;;  %5439 = vmatpush3.bf16.msra.mxu0 %v6392_v63  ;;  %v874_v55 = vadd.f32 %v5400_v49, %v7023_v53  ;;  %v865_v56 = vpop.f32.mrb[13].mxu1  ;;  %v2850_v41 = vld [vmem:[#allocation2 + $0x120] sm:$0xff] }
 0x19b   : > { %v627_v37 = vmax.f32 %v601_v26, 0.0  ;;  %v604_v39 = vadd.f32 %v7023_v53, %v603_v34  ;;  %5440 = vmatprep.subr.bf16.mxu0 %v6394_v16  ;;  %v964_v59 = vld [vmem:[#allocation2 + $0x90] sm:$0xff]  ;;  %v866_v61 = vadd.f32 %v7023_v53, %v865_v56  ;;  %v5401_v62 = vpop.f32.mrb[14].mxu1  ;;  %v2847_v26 = vld [vmem:[#allocation2 + $0xf8] sm:$0xff] }
 0x19c   : > { %646 = vst [vmem:[#allocation2 + $0xc1] sm:$0xff] %v629_v32  ;;  %v630_v42 = vmax.f32 %v612_v33, 0.0  ;;  %v962_v51 = vld [vmem:[#allocation2 + $0x78] sm:$0xff]  ;;  %v894_v1 = vmax.f32 %v874_v55, 0.0  ;;  %v877_v3 = vadd.f32 %v5401_v62, %v7023_v53  ;;  %v868_v4 = vpop.f32.mrb[15].mxu1  ;;  %v1169_v33 = vpack.c.bf16 %v1154_v17, %v1153_v13  ;;  %v6410_v62 = vld [vmem:[#allocation8 + $0x98] sm:$0xff]  }
 0x19d   : > { %644 = vst [vmem:[#allocation2 + $0xa9] sm:$0xff] %v627_v37  ;;  %v628_v45 = vmax.f32 %v604_v39, 0.0  ;;  %v965_v48 = vld [vmem:[#allocation2 + $0x98] sm:$0xff]  ;;  %v892_v6 = vmax.f32 %v866_v61, 0.0  ;;  %v869_v7 = vadd.f32 %v7023_v53, %v868_v4  ;;  %v7115_v34 = vpack.c.bf16 %v2847_v26, %v2846_v21  ;;  %v2848_v39 = vld [vmem:[#allocation2 + $0x108] sm:$0xff]  ;;  %v6424_v26 = vld [vmem:[#allocation8 + $0xd0] sm:$0xff]  }
 0x19e   : > { %647 = vst [vmem:[#allocation2 + $0xc9] sm:$0xff] %v630_v42  ;;  %5441 = vmatpush3.bf16.msra.mxu0 %v6394_v16  ;;  %v963_v54 = vld [vmem:[#allocation2 + $0x80] sm:$0xff]  ;;  %v7091_v57 = vpack.c.bf16 %v630_v42, %v629_v32  ;;  %v7098_v0 = vpack.c.bf16 %v965_v48, %v964_v59  ;;  %911 = vst [vmem:[#allocation2 + $0x181] sm:$0xff] %v894_v1  ;;  %v895_v8 = vmax.f32 %v877_v3, 0.0  ;;  %v6402_v32 = vld [vmem:[#allocation8 + $0x78] sm:$0xff]  }
 0x19f   : > { %645 = vst [vmem:[#allocation2 + $0xb1] sm:$0xff] %v628_v45  ;;  %v7093_v58 = vpack.c.bf16 %v963_v54, %v962_v51  ;;  %5442 = vmatprep.subr.bf16.mxu0 %v6396_v40  ;;  %v7096_v63 = vpack.c.bf16 %v628_v45, %v627_v37  ;;  %909 = vst [vmem:[#allocation2 + $0x169] sm:$0xff] %v892_v6  ;;  %v893_v11 = vmax.f32 %v869_v7, 0.0  ;;  %v2845_v16 = vld [vmem:[#allocation2 + $0xe0] sm:$0xff]  ;;  %v6404_v37 = vld [vmem:[#allocation8 + $0x80] sm:$0xff]  }
 0x1a0   : > { %912 = vst [vmem:[#allocation2 + $0x189] sm:$0xff] %v895_v8  ;;  %v7110_v29 = vpack.c.bf16 %v2845_v16, %v2844_v15  ;;  %v2851_v42 = vld [vmem:[#allocation2 + $0x128] sm:$0xff]  ;;  %v6407_v51 = vld [vmem:[#allocation8 + $0x60] sm:$0xff]   ;;  %v6408_v54 = vld [vmem:[#allocation8 + $0x90] sm:$0xff]  }
 0x1a1   : > { %5427 = vmatmul.mubr.bf16.gmra.mrb[24].mxu0 %v7093_v58  ;;  %910 = vst [vmem:[#allocation2 + $0x171] sm:$0xff] %v893_v11  ;;  %v7104_v23 = vpack.c.bf16 %v893_v11, %v892_v6  ;;  %v6405_v48 = vld [vmem:[#allocation8 + $0x58] sm:$0xff]   ;;  %v7123_v49 = vpack.c.bf16 %v2851_v42, %v2850_v41  ;;  %v2852_v55 = vld [vmem:[#allocation2 + $0x138] sm:$0xff]  ;;  %v2853_v56 = vld [vmem:[#allocation2 + $0x140] sm:$0xff] }
 0x1a2   : > { %5430 = vmatprep.mubr.bf16.mxu0 %v7098_v0  ;;  %5443 = vmatpush3.bf16.msra.mxu0 %v6396_v40  ;;  %v2849_v40 = vld [vmem:[#allocation2 + $0x110] sm:$0xff]  ;;  %v6409_v61 = vld [vmem:[#allocation8 + $0x68] sm:$0xff]   ;;  %v6411_v1 = vld [vmem:[#allocation8 + $0x70] sm:$0xff]  }
 0x1a3   : > { %5444 = vmatprep.subr.bf16.mxu0 %v6398_v60  ;;  %v2842_v18 = vld [vmem:[#allocation2 + $0xc0] sm:$0xff]  ;;  %v7119_v45 = vpack.c.bf16 %v2849_v40, %v2848_v39  ;;  %v2854_v59 = vld [vmem:[#allocation2 + $0x150] sm:$0xff]  ;;  %v6413_v7 = vld [vmem:[#allocation8 + $0x78] sm:$0xff]  }
 0x1a4   : > { %v966_v24 = vld [vmem:[#allocation2 + $0xa8] sm:$0xff]  ;;  %v6412_v3 = vld [vmem:[#allocation8 + $0xa0] sm:$0xff]   ;;  %v6414_v8 = vld [vmem:[#allocation8 + $0xa8] sm:$0xff]  }
 0x1a5   : > { %v2843_v20 = vld [vmem:[#allocation2 + $0xc8] sm:$0xff]  ;;  %v6417_v15 = vld [vmem:[#allocation8 + $0x88] sm:$0xff]   ;;  %v6428_v41 = vld [vmem:[#allocation8 + $0xe0] sm:$0xff]  }
 0x1a6   : > { %5445 = vmatpush3.bf16.msra.mxu0 %v6398_v60  ;;  %v7106_v53 = vpack.c.bf16 %v2843_v20, %v2842_v18  ;;  %v967_v25 = vld [vmem:[#allocation2 + $0xb0] sm:$0xff]  ;;  %v2855_v60 = vld [vmem:[#allocation2 + $0x158] sm:$0xff]  ;;  %v2856_v4 = vld [vmem:[#allocation2 + $0x168] sm:$0xff] }
 0x1a7   : > { %v7108_v28 = vpack.c.bf16 %v967_v25, %v966_v24  ;;  %5446 = vmatprep.subr.bf16.mxu0 %v6400_v10  ;;  %v1355_v11 = vld [vmem:[#allocation2 + $0x2] sm:$0xff]  ;;  %v1356_v13 = vld [vmem:[#allocation2 + $0xa] sm:$0xff]  ;;  %v1357_v17 = vld [vmem:[#allocation2 + $0x1a] sm:$0xff] }
 0x1a8   : > { %5706 = vmatprep.mubr.bf16.mxu1 %v7106_v53  ;;  %v2857_v6 = vld [vmem:[#allocation2 + $0x170] sm:$0xff]  ;;  %v1371_v16 = vpack.c.bf16 %v1356_v13, %v1355_v11  ;;  %v1358_v18 = vld [vmem:[#allocation2 + $0x22] sm:$0xff]  ;;  %v1360_v21 = vld [vmem:[#allocation2 + $0x3a] sm:$0xff] }
 0x1a9   : > { %5431 = vmatmul.mubr.bf16.gmra.mrb[28].mxu0 %v7108_v28  ;;  %5707 = vmatmul.mubr.bf16.vlgmr.msra.gmra.mrb[16].mxu1 %v7110_v29  ;;  %v1359_v20 = vld [vmem:[#allocation2 + $0x32] sm:$0xff]  ;;  %v7144_v24 = vpack.c.bf16 %v1358_v18, %v1357_v17  ;;  %v6426_v40 = vld [vmem:[#allocation8 + $0xd8] sm:$0xff]   ;;  %v1365_v42 = vld [vmem:[#allocation2 + $0x7a] sm:$0xff] }
 0x1aa   : > { %5723 = vmatpush3.bf16.msra.mxu1 %v7017_v52  ;;  %5447 = vmatpush3.bf16.msra.mxu0 %v6400_v10  ;;  %v6406_v52 = vld [vmem:[#allocation8 + $0x88] sm:$0xff]   ;;  %v6416_v10 = vld [vmem:[#allocation8 + $0xb0] sm:$0xff]   ;;  %v6423_v25 = vld [vmem:[#allocation8 + $0xa0] sm:$0xff]  }
 0x1ab   : > { %5710 = vmatprep.mubr.bf16.mxu1 %v7115_v34  ;;  %5724 = vmatprep.subr.bf16.mxu1 %v6401_v30  ;;  %v6434_v11 = vld [vmem:[#allocation8 + $0xf8] sm:$0xff]  }
 0x1ac   : > { %5448 = vmatprep.subr.bf16.mxu0 %v6402_v32  ;;  %5450 = vmatprep.mubr.bf16.mxu0 %v1169_v33  ;;  %v1363_v33 = vld [vmem:[#allocation2 + $0x62] sm:$0xff]  ;;  %v3253_v18 = vld [vmem:[#allocation2 + $0x12a] sm:$0xff] }
 0x1ad   : > { %v3252_v17 = vld [vmem:[#allocation2 + $0x122] sm:$0xff] }
 0x1ae   : > { %5725 = vmatpush3.bf16.msra.mxu1 %v6401_v30  ;;  %5449 = vmatpush3.bf16.msra.mxu0 %v6402_v32  ;;  %v1361_v30 = vld [vmem:[#allocation2 + $0x4a] sm:$0xff]  ;;  %v1362_v32 = vld [vmem:[#allocation2 + $0x52] sm:$0xff] }
 0x1af   : > { %5726 = vmatprep.subr.bf16.mxu1 %v6403_v35  ;;  %5466 = vmatprep.subr.bf16.mxu0 %v6404_v37 }
 0x1b1   : > { %5451 = vmatmul.mubr.bf16.vlgmr.msra.gmra.mrb[16].mxu0 %v7033_v9  ;;  %5711 = vmatmul.mubr.bf16.gmra.mrb[20].mxu1 %v7119_v45  ;;  %v7127_v9 = vpack.c.bf16 %v2853_v56, %v2852_v55  ;;  %v6429_v56 = vld [vmem:[#allocation8 + $0xb8] sm:$0xff]  }
 0x1b2   : > { %5727 = vmatpush3.bf16.msra.mxu1 %v6403_v35  ;;  %5454 = vmatprep.mubr.bf16.mxu0 %v7030_v5  ;;  %v7131_v5 = vpack.c.bf16 %v2855_v60, %v2854_v59  ;;  %v7152_v35 = vpack.c.bf16 %v1362_v32, %v1361_v30  ;;  %v3257_v32 = vld [vmem:[#allocation2 + $0x15a] sm:$0xff] }
 0x1b3   : > { %5467 = vmatpush3.bf16.msra.mxu0 %v6404_v37  ;;  %5714 = vmatprep.mubr.bf16.mxu1 %v7123_v49  ;;  %v6425_v37 = vld [vmem:[#allocation8 + $0xa8] sm:$0xff]  }
 0x1b4   : > { %5728 = vmatprep.subr.bf16.mxu1 %v6405_v48  ;;  %5468 = vmatprep.subr.bf16.mxu0 %v6406_v52 }
 0x1b6   : > { %5729 = vmatpush3.bf16.msra.mxu1 %v6405_v48  ;;  %v1366_v48 = vld [vmem:[#allocation2 + $0x82] sm:$0xff] }
 0x1b7   : > { %5469 = vmatpush3.bf16.msra.mxu0 %v6406_v52  ;;  %5730 = vmatprep.subr.bf16.mxu1 %v6407_v51  ;;  %v1367_v52 = vld [vmem:[#allocation2 + $0x92] sm:$0xff]  ;;  %v7160_v55 = vpack.c.bf16 %v1366_v48, %v1365_v42 }
 0x1b8   : > { %5470 = vmatprep.subr.bf16.mxu0 %v6408_v54  ;;  %v6446_v48 = vld [vmem:[#allocation8 + $0x128] sm:$0xff]  }
 0x1b9   : > { %5455 = vmatmul.mubr.bf16.gmra.mrb[20].mxu0 %v7051_v43  ;;  %5715 = vmatmul.mubr.bf16.gmra.mrb[24].mxu1 %v7127_v9  ;;  %v7135_v43 = vpack.c.bf16 %v2857_v6, %v2856_v4  ;;  %v1370_v4 = vld [vmem:[#allocation2 + $0xb2] sm:$0xff] }
 0x1ba   : > { %5731 = vmatpush3.bf16.msra.mxu1 %v6407_v51  ;;  %5458 = vmatprep.mubr.bf16.mxu0 %v7046_v36  ;;  %v6415_v36 = vld [vmem:[#allocation8 + $0x80] sm:$0xff]   ;;  %v3244_v51 = vld [vmem:[#allocation2 + $0xc2] sm:$0xff] }
 0x1bb   : > { %5471 = vmatpush3.bf16.msra.mxu0 %v6408_v54  ;;  %5718 = vmatprep.mubr.bf16.mxu1 %v7131_v5  ;;  %v3245_v54 = vld [vmem:[#allocation2 + $0xca] sm:$0xff] }
 0x1bc   : > { %5732 = vmatprep.subr.bf16.mxu1 %v6409_v61  ;;  %5472 = vmatprep.subr.bf16.mxu0 %v6410_v62  ;;  %v7166_v60 = vpack.c.bf16 %v3245_v54, %v3244_v51  ;;  %v1759_v51 = vld [vmem:[#allocation2 + $0x19] sm:$0xff] }
 0x1bd   : > { %v6449_v54 = vld [vmem:[#allocation8 + $0x108] sm:$0xff]  }
 0x1be   : > { %5733 = vmatpush3.bf16.msra.mxu1 %v6409_v61  ;;  %v6431_v61 = vld [vmem:[#allocation8 + $0xc0] sm:$0xff]  }
 0x1bf   : > { %5473 = vmatpush3.bf16.msra.mxu0 %v6410_v62  ;;  %5734 = vmatprep.subr.bf16.mxu1 %v6411_v1  ;;  %v6432_v62 = vld [vmem:[#allocation8 + $0xf0] sm:$0xff]  }
 0x1c0   : > { %5474 = vmatprep.subr.bf16.mxu0 %v6412_v3 }
 0x1c1   : > { %5459 = vmatmul.mubr.bf16.gmra.mrb[24].mxu0 %v7074_v19  ;;  %5719 = vmatmul.mubr.bf16.gmra.mrb[28].mxu1 %v7135_v43  ;;  %v6418_v19 = vld [vmem:[#allocation8 + $0xb8] sm:$0xff]  }
 0x1c2   : > { %5735 = vmatpush3.bf16.msra.mxu1 %v6411_v1  ;;  %5462 = vmatprep.mubr.bf16.mxu0 %v7069_v12  ;;  %v6419_v12 = vld [vmem:[#allocation8 + $0x90] sm:$0xff]  }
 0x1c3   : > { %5475 = vmatpush3.bf16.msra.mxu0 %v6412_v3  ;;  %5738 = vmatprep.mubr.bf16.mxu1 %v7091_v57  ;;  %v6420_v57 = vld [vmem:[#allocation8 + $0xc0] sm:$0xff]   ;;  %v3246_v1 = vld [vmem:[#allocation2 + $0xda] sm:$0xff]  ;;  %v3247_v3 = vld [vmem:[#allocation2 + $0xe2] sm:$0xff] }
 0x1c4   : > { %5736 = vmatprep.subr.bf16.mxu1 %v6413_v7  ;;  %5476 = vmatprep.subr.bf16.mxu0 %v6414_v8  ;;  %v7170_v6 = vpack.c.bf16 %v3247_v3, %v3246_v1  ;;  %v1763_v1 = vld [vmem:[#allocation2 + $0x49] sm:$0xff] }
 0x1c6   : > { %5737 = vmatpush3.bf16.msra.mxu1 %v6413_v7  ;;  %v3248_v7 = vld [vmem:[#allocation2 + $0xf2] sm:$0xff] }
 0x1c7   : > { %5477 = vmatpush3.bf16.msra.mxu0 %v6414_v8  ;;  %5754 = vmatprep.subr.bf16.mxu1 %v6415_v36  ;;  %v3249_v8 = vld [vmem:[#allocation2 + $0xfa] sm:$0xff] }
 0x1c8   : > { %5478 = vmatprep.subr.bf16.mxu0 %v6416_v10  ;;  %v7176_v13 = vpack.c.bf16 %v3249_v8, %v3248_v7  ;;  %v1766_v7 = vld [vmem:[#allocation2 + $0x69] sm:$0xff]  ;;  %v1768_v8 = vld [vmem:[#allocation2 + $0x81] sm:$0xff] }
 0x1c9   : > { %5463 = vmatmul.mubr.bf16.gmra.mrb[28].mxu0 %v7096_v63  ;;  %5739 = vmatmul.mubr.bf16.vlgmr.msra.gmra.mrb[16].mxu1 %v7043_v31  ;;  %v6421_v31 = vld [vmem:[#allocation8 + $0x98] sm:$0xff]   ;;  %v6422_v63 = vld [vmem:[#allocation8 + $0xc8] sm:$0xff]  }
 0x1ca   : > { %5755 = vmatpush3.bf16.msra.mxu1 %v6415_v36  ;;  %5742 = vmatprep.mubr.bf16.mxu1 %v7041_v27  ;;  %v7147_v27 = vpack.c.bf16 %v1360_v21, %v1359_v20  ;;  %v6437_v20 = vld [vmem:[#allocation8 + $0xd8] sm:$0xff]   ;;  %v7184_v21 = vpack.c.bf16 %v3253_v18, %v3252_v17  ;;  %v3459_v17 = vld [vmem:[#allocation2 + $0x180] sm:$0xff] }
 0x1cb   : > { %5479 = vmatpush3.bf16.msra.mxu0 %v6416_v10  ;;  %5756 = vmatprep.subr.bf16.mxu1 %v6417_v15  ;;  %v6433_v10 = vld [vmem:[#allocation8 + $0xc8] sm:$0xff]   ;;  %v3460_v18 = vld [vmem:[#allocation2 + $0x188] sm:$0xff] }
 0x1cc   : > { %5480 = vmatprep.subr.bf16.mxu0 %v6418_v19  ;;  %5482 = vmatprep.mubr.bf16.mxu0 %v1371_v16  ;;  %v3250_v16 = vld [vmem:[#allocation2 + $0x10a] sm:$0xff] }
 0x1ce   : > { %5757 = vmatpush3.bf16.msra.mxu1 %v6417_v15  ;;  %v6435_v15 = vld [vmem:[#allocation8 + $0xd0] sm:$0xff]  }
 0x1cf   : > { %5481 = vmatpush3.bf16.msra.mxu0 %v6418_v19  ;;  %5758 = vmatprep.subr.bf16.mxu1 %v6419_v12  ;;  %v6436_v19 = vld [vmem:[#allocation8 + $0x100] sm:$0xff]  }
 0x1d0   : > { %5498 = vmatprep.subr.bf16.mxu0 %v6420_v57 }
 0x1d1   : > { %5743 = vmatmul.mubr.bf16.gmra.mrb[20].mxu1 %v7066_v46  ;;  %v1364_v46 = vld [vmem:[#allocation2 + $0x6a] sm:$0xff] }
 0x1d2   : > { %5483 = vmatmul.mubr.bf16.vlgmr.msra.gmra.mrb[16].mxu0 %v7144_v24  ;;  %5759 = vmatpush3.bf16.msra.mxu1 %v6419_v12  ;;  %v7155_v39 = vpack.c.bf16 %v1364_v46, %v1363_v33  ;;  %v3251_v12 = vld [vmem:[#allocation2 + $0x112] sm:$0xff] }
 0x1d3   : > { %5486 = vmatprep.mubr.bf16.mxu0 %v7147_v27  ;;  %5499 = vmatpush3.bf16.msra.mxu0 %v6420_v57  ;;  %v7180_v57 = vpack.c.bf16 %v3251_v12, %v3250_v16  ;;  %v6441_v33 = vld [vmem:[#allocation8 + $0xe8] sm:$0xff]   ;;  %v6458_v16 = vld [vmem:[#allocation8 + $0x158] sm:$0xff]   ;;  %v6460_v12 = vld [vmem:[#allocation8 + $0x160] sm:$0xff]  }
 0x1d4   : > { %5746 = vmatprep.mubr.bf16.mxu1 %v7064_v2  ;;  %5760 = vmatprep.subr.bf16.mxu1 %v6421_v31  ;;  %v6427_v2 = vld [vmem:[#allocation8 + $0xb0] sm:$0xff]  }
 0x1d5   : > { %5500 = vmatprep.subr.bf16.mxu0 %v6422_v63 }
 0x1d6   : > { %5761 = vmatpush3.bf16.msra.mxu1 %v6421_v31  ;;  %v6439_v31 = vld [vmem:[#allocation8 + $0xe0] sm:$0xff]  }
 0x1d7   : > { %5501 = vmatpush3.bf16.msra.mxu0 %v6422_v63  ;;  %5762 = vmatprep.subr.bf16.mxu1 %v6423_v25  ;;  %v6440_v63 = vld [vmem:[#allocation8 + $0x110] sm:$0xff]  }
 0x1d8   : > { %5502 = vmatprep.subr.bf16.mxu0 %v6424_v26 }
 0x1d9   : > { %5747 = vmatmul.mubr.bf16.gmra.mrb[24].mxu1 %v7088_v50  ;;  %v1368_v50 = vld [vmem:[#allocation2 + $0x9a] sm:$0xff] }
 0x1da   : > { %5487 = vmatmul.mubr.bf16.gmra.mrb[20].mxu0 %v7152_v35  ;;  %5763 = vmatpush3.bf16.msra.mxu1 %v6423_v25  ;;  %v7163_v59 = vpack.c.bf16 %v1368_v50, %v1367_v52  ;;  %v3254_v25 = vld [vmem:[#allocation2 + $0x13a] sm:$0xff] }
 0x1db   : > { %5490 = vmatprep.mubr.bf16.mxu0 %v7155_v39  ;;  %5503 = vmatpush3.bf16.msra.mxu0 %v6424_v26  ;;  %v3255_v26 = vld [vmem:[#allocation2 + $0x142] sm:$0xff] }
 0x1dc   : > { %5750 = vmatprep.mubr.bf16.mxu1 %v7086_v44  ;;  %5764 = vmatprep.subr.bf16.mxu1 %v6425_v37  ;;  %v6430_v44 = vld [vmem:[#allocation8 + $0xe8] sm:$0xff]   ;;  %v7188_v30 = vpack.c.bf16 %v3255_v26, %v3254_v25  ;;  %v6448_v52 = vld [vmem:[#allocation8 + $0x130] sm:$0xff]  }
 0x1dd   : > { %5504 = vmatprep.subr.bf16.mxu0 %v6426_v40  ;;  %v1760_v50 = vld [vmem:[#allocation2 + $0x21] sm:$0xff] }
 0x1de   : > { %5765 = vmatpush3.bf16.msra.mxu1 %v6425_v37  ;;  %v6443_v37 = vld [vmem:[#allocation8 + $0xf0] sm:$0xff]  }
 0x1df   : > { %5505 = vmatpush3.bf16.msra.mxu0 %v6426_v40  ;;  %5766 = vmatprep.subr.bf16.mxu1 %v6427_v2  ;;  %v6444_v40 = vld [vmem:[#allocation8 + $0x120] sm:$0xff]   ;;  %v3647_v25 = vld [vmem:[#allocation2 + $0xe1] sm:$0xff] }
 0x1e0   : > { %5506 = vmatprep.subr.bf16.mxu0 %v6428_v41 }
 0x1e1   : > { %5751 = vmatmul.mubr.bf16.gmra.mrb[28].mxu1 %v7104_v23  ;;  %v1369_v23 = vld [vmem:[#allocation2 + $0xaa] sm:$0xff] }
 0x1e2   : > { %5491 = vmatmul.mubr.bf16.gmra.mrb[24].mxu0 %v7160_v55  ;;  %5767 = vmatpush3.bf16.msra.mxu1 %v6427_v2  ;;  %v7172_v36 = vpack.c.bf16 %v1370_v4, %v1369_v23  ;;  %v3258_v2 = vld [vmem:[#allocation2 + $0x16a] sm:$0xff]  ;;  %v6454_v23 = vld [vmem:[#allocation8 + $0x148] sm:$0xff]   ;;  %v6456_v4 = vld [vmem:[#allocation8 + $0x150] sm:$0xff]  }
 0x1e3   : > { %5494 = vmatprep.mubr.bf16.mxu0 %v7163_v59  ;;  %5507 = vmatpush3.bf16.msra.mxu0 %v6428_v41  ;;  %v3259_v41 = vld [vmem:[#allocation2 + $0x172] sm:$0xff] }
 0x1e4   : > { %5770 = vmatprep.mubr.bf16.mxu1 %v7166_v60  ;;  %5768 = vmatprep.subr.bf16.mxu1 %v6429_v56  ;;  %v7196_v42 = vpack.c.bf16 %v3259_v41, %v3258_v2  ;;  %v3648_v2 = vld [vmem:[#allocation2 + $0xf1] sm:$0xff]  ;;  %v3649_v41 = vld [vmem:[#allocation2 + $0xf9] sm:$0xff] }
 0x1e5   : > { %5508 = vmatprep.subr.bf16.mxu0 %v6430_v44 }
 0x1e6   : > { %5769 = vmatpush3.bf16.msra.mxu1 %v6429_v56  ;;  %v6450_v56 = vld [vmem:[#allocation8 + $0x138] sm:$0xff]  }
 0x1e7   : > { %5509 = vmatpush3.bf16.msra.mxu0 %v6430_v44  ;;  %5786 = vmatprep.subr.bf16.mxu1 %v6431_v61  ;;  %v1762_v44 = vld [vmem:[#allocation2 + $0x39] sm:$0xff] }
 0x1e8   : > { %5510 = vmatprep.subr.bf16.mxu0 %v6432_v62 }
 0x1e9   : > { %5771 = vmatmul.mubr.bf16.vlgmr.msra.gmra.mrb[16].mxu1 %v7170_v6 }
 0x1ea   : > { %5495 = vmatmul.mubr.bf16.gmra.mrb[28].mxu0 %v7172_v36  ;;  %5787 = vmatpush3.bf16.msra.mxu1 %v6431_v61  ;;  %v1764_v61 = vld [vmem:[#allocation2 + $0x51] sm:$0xff] }
 0x1eb   : > { %5511 = vmatpush3.bf16.msra.mxu0 %v6432_v62  ;;  %5514 = vmatprep.mubr.bf16.mxu0 %v7048_v38  ;;  %v6438_v38 = vld [vmem:[#allocation8 + $0x108] sm:$0xff]   ;;  %v7208_v3 = vpack.c.bf16 %v1764_v61, %v1763_v1  ;;  %v3653_v61 = vld [vmem:[#allocation2 + $0x129] sm:$0xff] }
 0x1ec   : > { %5774 = vmatprep.mubr.bf16.mxu1 %v7176_v13  ;;  %5788 = vmatprep.subr.bf16.mxu1 %v6433_v10  ;;  %v1761_v62 = vld [vmem:[#allocation2 + $0x31] sm:$0xff]  ;;  %v3654_v1 = vld [vmem:[#allocation2 + $0x139] sm:$0xff] }
 0x1ed   : > { %5512 = vmatprep.subr.bf16.mxu0 %v6434_v11 }
 0x1ee   : > { %5789 = vmatpush3.bf16.msra.mxu1 %v6433_v10 }
 0x1ef   : > { %5513 = vmatpush3.bf16.msra.mxu0 %v6434_v11  ;;  %5790 = vmatprep.subr.bf16.mxu1 %v6435_v15  ;;  %v1767_v11 = vld [vmem:[#allocation2 + $0x79] sm:$0xff] }
 0x1f0   : > { %5530 = vmatprep.subr.bf16.mxu0 %v6436_v19 }
 0x1f1   : > { %5775 = vmatmul.mubr.bf16.gmra.mrb[20].mxu1 %v7180_v57 }
 0x1f2   : > { %5515 = vmatmul.mubr.bf16.vlgmr.msra.gmra.mrb[16].mxu0 %v7054_v47  ;;  %5791 = vmatpush3.bf16.msra.mxu1 %v6435_v15  ;;  %v3256_v47 = vld [vmem:[#allocation2 + $0x152] sm:$0xff] }
 0x1f3   : > { %5518 = vmatprep.mubr.bf16.mxu0 %v7071_v14  ;;  %5531 = vmatpush3.bf16.msra.mxu0 %v6436_v19  ;;  %v6442_v14 = vld [vmem:[#allocation8 + $0x118] sm:$0xff]   ;;  %v7192_v46 = vpack.c.bf16 %v3257_v32, %v3256_v47  ;;  %v6457_v15 = vld [vmem:[#allocation8 + $0x128] sm:$0xff]   ;;  %v7216_v19 = vpack.c.bf16 %v1768_v8, %v1767_v11 }
 0x1f4   : > { %5778 = vmatprep.mubr.bf16.mxu1 %v7184_v21  ;;  %5792 = vmatprep.subr.bf16.mxu1 %v6437_v20  ;;  %v1771_v47 = vld [vmem:[#allocation2 + $0xa9] sm:$0xff]  ;;  %v3656_v8 = vld [vmem:[#allocation2 + $0x151] sm:$0xff] }
 0x1f5   : > { %5532 = vmatprep.subr.bf16.mxu0 %v6438_v38 }
 0x1f6   : > { %5793 = vmatpush3.bf16.msra.mxu1 %v6437_v20  ;;  %v1770_v20 = vld [vmem:[#allocation2 + $0x99] sm:$0xff] }
 0x1f7   : > { %5533 = vmatpush3.bf16.msra.mxu0 %v6438_v38  ;;  %5794 = vmatprep.subr.bf16.mxu1 %v6439_v31  ;;  %v1769_v38 = vld [vmem:[#allocation2 + $0x91] sm:$0xff] }
 0x1f8   : > { %5534 = vmatprep.subr.bf16.mxu0 %v6440_v63  ;;  %v7223_v26 = vpack.c.bf16 %v1770_v20, %v1769_v38  ;;  %v3661_v20 = vld [vmem:[#allocation2 + $0x189] sm:$0xff]  ;;  %v6478_v38 = vld [vmem:[#allocation8 + $0x1a8] sm:$0xff]  }
 0x1f9   : > { %5779 = vmatmul.mubr.bf16.gmra.mrb[24].mxu1 %v7188_v30 }
 0x1fa   : > { %5519 = vmatmul.mubr.bf16.gmra.mrb[20].mxu0 %v7077_v22  ;;  %5795 = vmatpush3.bf16.msra.mxu1 %v6439_v31  ;;  %v6445_v22 = vld [vmem:[#allocation8 + $0xf8] sm:$0xff]   ;;  %v7221_v31 = vpack.c.bf16 %v3460_v18, %v3459_v17  ;;  %v6476_v17 = vld [vmem:[#allocation8 + $0x1a0] sm:$0xff]  }
 0x1fb   : > { %5522 = vmatprep.mubr.bf16.mxu0 %v7093_v58  ;;  %5535 = vmatpush3.bf16.msra.mxu0 %v6440_v63  ;;  %v6447_v58 = vld [vmem:[#allocation8 + $0x100] sm:$0xff]   ;;  %v3646_v63 = vld [vmem:[#allocation2 + $0xd9] sm:$0xff]  ;;  %v3660_v18 = vld [vmem:[#allocation2 + $0x181] sm:$0xff] }
 0x1fc   : > { %5782 = vmatprep.mubr.bf16.mxu1 %v7192_v46  ;;  %5796 = vmatprep.subr.bf16.mxu1 %v6441_v33 }
 0x1fd   : > { %5536 = vmatprep.subr.bf16.mxu0 %v6442_v14 }
 0x1fe   : > { %5797 = vmatpush3.bf16.msra.mxu1 %v6441_v33  ;;  %v6462_v33 = vld [vmem:[#allocation8 + $0x168] sm:$0xff]  }
 0x1ff   : > { %5537 = vmatpush3.bf16.msra.mxu0 %v6442_v14  ;;  %5798 = vmatprep.subr.bf16.mxu1 %v6443_v37  ;;  %v7229_v14 = vpack.c.bf16 %v3647_v25, %v3646_v63  ;;  %v6480_v63 = vld [vmem:[#allocation8 + $0x1b0] sm:$0xff]   ;;  %v2165_v25 = vld [vmem:[#allocation2 + $0x38] sm:$0xff] }
 0x200   : > { %5538 = vmatprep.subr.bf16.mxu0 %v6444_v40 }
 0x201   : > { %5783 = vmatmul.mubr.bf16.gmra.mrb[28].mxu1 %v7196_v42 }
 0x202   : > { %5523 = vmatmul.mubr.bf16.gmra.mrb[24].mxu0 %v7098_v0  ;;  %5799 = vmatpush3.bf16.msra.mxu1 %v6443_v37  ;;  %v1775_v0 = vpack.c.bf16 %v1760_v50, %v1759_v51  ;;  %v6463_v37 = vld [vmem:[#allocation8 + $0x140] sm:$0xff]  }
 0x203   : > { %5526 = vmatprep.mubr.bf16.mxu0 %v7108_v28  ;;  %5539 = vmatpush3.bf16.msra.mxu0 %v6444_v40  ;;  %v6451_v28 = vld [vmem:[#allocation8 + $0x110] sm:$0xff]   ;;  %v3651_v50 = vld [vmem:[#allocation2 + $0x111] sm:$0xff] }
 0x204   : > { %5802 = vmatprep.mubr.bf16.mxu1 %v7110_v29  ;;  %5800 = vmatprep.subr.bf16.mxu1 %v6445_v22  ;;  %v6452_v29 = vld [vmem:[#allocation8 + $0x140] sm:$0xff]   ;;  %v6464_v40 = vld [vmem:[#allocation8 + $0x170] sm:$0xff]  }
 0x205   : > { %5540 = vmatprep.subr.bf16.mxu0 %v6446_v48 }
 0x206   : > { %5801 = vmatpush3.bf16.msra.mxu1 %v6445_v22  ;;  %v1774_v22 = vld [vmem:[#allocation2 + $0xc9] sm:$0xff] }
 0x207   : > { %5541 = vmatpush3.bf16.msra.mxu0 %v6446_v48  ;;  %5818 = vmatprep.subr.bf16.mxu1 %v6447_v58  ;;  %v1773_v48 = vld [vmem:[#allocation2 + $0xc1] sm:$0xff] }
 0x208   : > { %5542 = vmatprep.subr.bf16.mxu0 %v6448_v52  ;;  %v7235_v51 = vpack.c.bf16 %v1774_v22, %v1773_v48  ;;  %v6485_v22 = vld [vmem:[#allocation8 + $0x198] sm:$0xff]   ;;  %v6486_v48 = vld [vmem:[#allocation8 + $0x1c8] sm:$0xff]  }
 0x209   : > { %5803 = vmatmul.mubr.bf16.vlgmr.msra.gmra.mrb[16].mxu1 %v7115_v34  ;;  %v7205_v34 = vpack.c.bf16 %v1762_v44, %v1761_v62  ;;  %v3652_v44 = vld [vmem:[#allocation2 + $0x121] sm:$0xff] }
 0x20a   : > { %5527 = vmatmul.mubr.bf16.gmra.mrb[28].mxu0 %v7106_v53  ;;  %5819 = vmatpush3.bf16.msra.mxu1 %v6447_v58  ;;  %v6453_v53 = vld [vmem:[#allocation8 + $0x118] sm:$0xff]   ;;  %v7233_v58 = vpack.c.bf16 %v3649_v41, %v3648_v2  ;;  %v7243_v62 = vpack.c.bf16 %v3653_v61, %v3652_v44  ;;  %v2168_v41 = vld [vmem:[#allocation2 + $0x60] sm:$0xff] }
 0x20b   : > { %5543 = vmatpush3.bf16.msra.mxu0 %v6448_v52  ;;  %5546 = vmatprep.mubr.bf16.mxu0 %v1775_v0  ;;  %v3650_v52 = vld [vmem:[#allocation2 + $0x109] sm:$0xff] }
 0x20c   : > { %5806 = vmatprep.mubr.bf16.mxu1 %v7119_v45  ;;  %5820 = vmatprep.subr.bf16.mxu1 %v6449_v54  ;;  %v6455_v45 = vld [vmem:[#allocation8 + $0x120] sm:$0xff]   ;;  %v6466_v0 = vld [vmem:[#allocation8 + $0x178] sm:$0xff]  }
 0x20d   : > { %5544 = vmatprep.subr.bf16.mxu0 %v6450_v56  ;;  %v2166_v2 = vld [vmem:[#allocation2 + $0x48] sm:$0xff] }
 0x20e   : > { %5821 = vmatpush3.bf16.msra.mxu1 %v6449_v54  ;;  %v6465_v54 = vld [vmem:[#allocation8 + $0x148] sm:$0xff]   ;;  %v6490_v61 = vld [vmem:[#allocation8 + $0x1d8] sm:$0xff]  }
 0x20f   : > { %5545 = vmatpush3.bf16.msra.mxu0 %v6450_v56  ;;  %5822 = vmatprep.subr.bf16.mxu1 %v6451_v28  ;;  %v7239_v56 = vpack.c.bf16 %v3651_v50, %v3650_v52  ;;  %v6488_v52 = vld [vmem:[#allocation8 + $0x1d0] sm:$0xff]  }
 0x210   : > { %5562 = vmatprep.subr.bf16.mxu0 %v6452_v29  ;;  %v2171_v50 = vld [vmem:[#allocation2 + $0x80] sm:$0xff] }
 0x211   : > { %5807 = vmatmul.mubr.bf16.gmra.mrb[20].mxu1 %v7123_v49  ;;  %v1765_v49 = vld [vmem:[#allocation2 + $0x61] sm:$0xff] }
 0x212   : > { %5547 = vmatmul.mubr.bf16.vlgmr.msra.gmra.mrb[16].mxu0 %v7205_v34  ;;  %5823 = vmatpush3.bf16.msra.mxu1 %v6451_v28  ;;  %v7213_v10 = vpack.c.bf16 %v1766_v7, %v1765_v49  ;;  %v6467_v28 = vld [vmem:[#allocation8 + $0x150] sm:$0xff]  }
 0x213   : > { %5550 = vmatprep.mubr.bf16.mxu0 %v7208_v3  ;;  %5563 = vmatpush3.bf16.msra.mxu0 %v6452_v29  ;;  %v6468_v29 = vld [vmem:[#allocation8 + $0x180] sm:$0xff]   ;;  %v6472_v7 = vld [vmem:[#allocation8 + $0x190] sm:$0xff]  }
 0x214   : > { %5810 = vmatprep.mubr.bf16.mxu1 %v7127_v9  ;;  %5824 = vmatprep.subr.bf16.mxu1 %v6453_v53  ;;  %v6459_v9 = vld [vmem:[#allocation8 + $0x130] sm:$0xff]  }
 0x215   : > { %5564 = vmatprep.subr.bf16.mxu0 %v6454_v23  ;;  %v3657_v49 = vld [vmem:[#allocation2 + $0x159] sm:$0xff] }
 0x216   : > { %5825 = vmatpush3.bf16.msra.mxu1 %v6453_v53  ;;  %v3655_v53 = vld [vmem:[#allocation2 + $0x141] sm:$0xff]  ;;  %v7251_v11 = vpack.c.bf16 %v3657_v49, %v3656_v8  ;;  %v4049_v8 = vld [vmem:[#allocation2 + $0xf0] sm:$0xff]  ;;  %v4050_v49 = vld [vmem:[#allocation2 + $0xf8] sm:$0xff] }
 0x217   : > { %5565 = vmatpush3.bf16.msra.mxu0 %v6454_v23  ;;  %5826 = vmatprep.subr.bf16.mxu1 %v6455_v45  ;;  %v6469_v23 = vld [vmem:[#allocation8 + $0x158] sm:$0xff]  }
 0x218   : > { %5566 = vmatprep.subr.bf16.mxu0 %v6456_v4 }
 0x219   : > { %5811 = vmatmul.mubr.bf16.gmra.mrb[24].mxu1 %v7131_v5  ;;  %v1772_v5 = vld [vmem:[#allocation2 + $0xb1] sm:$0xff] }
 0x21a   : > { %5551 = vmatmul.mubr.bf16.gmra.mrb[20].mxu0 %v7213_v10  ;;  %5827 = vmatpush3.bf16.msra.mxu1 %v6455_v45  ;;  %v7226_v32 = vpack.c.bf16 %v1772_v5, %v1771_v47  ;;  %v7247_v45 = vpack.c.bf16 %v3655_v53, %v3654_v1  ;;  %v7259_v5 = vpack.c.bf16 %v3661_v20, %v3660_v18  ;;  %v2164_v47 = vld [vmem:[#allocation2 + $0x30] sm:$0xff]  ;;  %v3861_v53 = vld [vmem:[#allocation2 + $0x182] sm:$0xff] }
 0x21b   : > { %5554 = vmatprep.mubr.bf16.mxu0 %v7216_v19  ;;  %5567 = vmatpush3.bf16.msra.mxu0 %v6456_v4  ;;  %v6471_v4 = vld [vmem:[#allocation8 + $0x160] sm:$0xff]   ;;  %v6496_v18 = vld [vmem:[#allocation8 + $0x1f0] sm:$0xff]   ;;  %v4051_v20 = vld [vmem:[#allocation2 + $0x108] sm:$0xff] }
 0x21c   : > { %5814 = vmatprep.mubr.bf16.mxu1 %v7135_v43  ;;  %5828 = vmatprep.subr.bf16.mxu1 %v6457_v15  ;;  %v6461_v43 = vld [vmem:[#allocation8 + $0x138] sm:$0xff]   ;;  %v6492_v1 = vld [vmem:[#allocation8 + $0x1e0] sm:$0xff]  }
 0x21d   : > { %5568 = vmatprep.subr.bf16.mxu0 %v6458_v16 }
 0x21e   : > { %5829 = vmatpush3.bf16.msra.mxu1 %v6457_v15  ;;  %v3659_v15 = vld [vmem:[#allocation2 + $0x171] sm:$0xff] }
 0x21f   : > { %5569 = vmatpush3.bf16.msra.mxu0 %v6458_v16  ;;  %5830 = vmatprep.subr.bf16.mxu1 %v6459_v9  ;;  %v6473_v16 = vld [vmem:[#allocation8 + $0x168] sm:$0xff]  }
 0x220   : > { %5570 = vmatprep.subr.bf16.mxu0 %v6460_v12 }
 0x221   : > { %5815 = vmatmul.mubr.bf16.gmra.mrb[28].mxu1 %v7221_v31 }
 0x222   : > { %5555 = vmatmul.mubr.bf16.gmra.mrb[24].mxu0 %v7223_v26  ;;  %5831 = vmatpush3.bf16.msra.mxu1 %v6459_v9 }
 0x223   : > { %5558 = vmatprep.mubr.bf16.mxu0 %v7226_v32  ;;  %5571 = vmatpush3.bf16.msra.mxu0 %v6460_v12  ;;  %v6475_v12 = vld [vmem:[#allocation8 + $0x170] sm:$0xff]  }
 0x224   : > { %5834 = vmatprep.mubr.bf16.mxu1 %v7229_v14  ;;  %5832 = vmatprep.subr.bf16.mxu1 %v6461_v43 }
 0x225   : > { %5572 = vmatprep.subr.bf16.mxu0 %v6462_v33 }
 0x226   : > { %5833 = vmatpush3.bf16.msra.mxu1 %v6461_v43  ;;  %v6481_v43 = vld [vmem:[#allocation8 + $0x188] sm:$0xff]  }
 0x227   : > { %5573 = vmatpush3.bf16.msra.mxu0 %v6462_v33  ;;  %5850 = vmatprep.subr.bf16.mxu1 %v6463_v37  ;;  %v6482_v33 = vld [vmem:[#allocation8 + $0x1b8] sm:$0xff]  }
 0x228   : > { %5574 = vmatprep.subr.bf16.mxu0 %v6464_v40 }
 0x229   : > { %5835 = vmatmul.mubr.bf16.vlgmr.msra.gmra.mrb[16].mxu1 %v7233_v58 }
 0x22a   : > { %5559 = vmatmul.mubr.bf16.gmra.mrb[28].mxu0 %v7235_v51  ;;  %5851 = vmatpush3.bf16.msra.mxu1 %v6463_v37  ;;  %v2167_v37 = vld [vmem:[#allocation2 + $0x50] sm:$0xff] }
 0x22b   : > { %5575 = vmatpush3.bf16.msra.mxu0 %v6464_v40  ;;  %5578 = vmatprep.mubr.bf16.mxu0 %v7144_v24  ;;  %v6470_v24 = vld [vmem:[#allocation8 + $0x188] sm:$0xff]   ;;  %v2169_v40 = vld [vmem:[#allocation2 + $0x68] sm:$0xff] }
 0x22c   : > { %5838 = vmatprep.mubr.bf16.mxu1 %v7239_v56  ;;  %5852 = vmatprep.subr.bf16.mxu1 %v6465_v54 }
 0x22d   : > { %5576 = vmatprep.subr.bf16.mxu0 %v6466_v0 }
 0x22e   : > { %5853 = vmatpush3.bf16.msra.mxu1 %v6465_v54  ;;  %v2173_v54 = vld [vmem:[#allocation2 + $0x98] sm:$0xff] }
 0x22f   : > { %5577 = vmatpush3.bf16.msra.mxu0 %v6466_v0  ;;  %5854 = vmatprep.subr.bf16.mxu1 %v6467_v28  ;;  %v2170_v0 = vld [vmem:[#allocation2 + $0x78] sm:$0xff] }
 0x230   : > { %5594 = vmatprep.subr.bf16.mxu0 %v6468_v29 }
 0x231   : > { %5839 = vmatmul.mubr.bf16.gmra.mrb[20].mxu1 %v7243_v62 }
 0x232   : > { %5579 = vmatmul.mubr.bf16.vlgmr.msra.gmra.mrb[16].mxu0 %v7147_v27  ;;  %5855 = vmatpush3.bf16.msra.mxu1 %v6467_v28  ;;  %v3658_v27 = vld [vmem:[#allocation2 + $0x169] sm:$0xff]  ;;  %v2183_v28 = vpack.c.bf16 %v2171_v50, %v2170_v0 }
 0x233   : > { %5582 = vmatprep.mubr.bf16.mxu0 %v7152_v35  ;;  %5595 = vmatpush3.bf16.msra.mxu0 %v6468_v29  ;;  %v6474_v35 = vld [vmem:[#allocation8 + $0x198] sm:$0xff]   ;;  %v7255_v9 = vpack.c.bf16 %v3659_v15, %v3658_v27  ;;  %v6489_v29 = vld [vmem:[#allocation8 + $0x1a8] sm:$0xff]   ;;  %v2176_v15 = vld [vmem:[#allocation2 + $0xc0] sm:$0xff] }
 0x234   : > { %5842 = vmatprep.mubr.bf16.mxu1 %v7247_v45  ;;  %5856 = vmatprep.subr.bf16.mxu1 %v6469_v23  ;;  %v4059_v50 = vld [vmem:[#allocation2 + $0x168] sm:$0xff] }
 0x235   : > { %5596 = vmatprep.subr.bf16.mxu0 %v6470_v24 }
 0x236   : > { %5857 = vmatpush3.bf16.msra.mxu1 %v6469_v23  ;;  %v3862_v23 = vld [vmem:[#allocation2 + $0x18a] sm:$0xff] }
 0x237   : > { %5597 = vmatpush3.bf16.msra.mxu0 %v6470_v24  ;;  %5858 = vmatprep.subr.bf16.mxu1 %v6471_v4  ;;  %v2175_v24 = vld [vmem:[#allocation2 + $0xb0] sm:$0xff] }
 0x238   : > { %5598 = vmatprep.subr.bf16.mxu0 %v6472_v7 }
 0x239   : > { %5843 = vmatmul.mubr.bf16.gmra.mrb[24].mxu1 %v7251_v11 }
 0x23a   : > { %5583 = vmatmul.mubr.bf16.gmra.mrb[20].mxu0 %v7155_v39  ;;  %5859 = vmatpush3.bf16.msra.mxu1 %v6471_v4  ;;  %v6477_v39 = vld [vmem:[#allocation8 + $0x178] sm:$0xff]  }
 0x23b   : > { %5586 = vmatprep.mubr.bf16.mxu0 %v7160_v55  ;;  %5599 = vmatpush3.bf16.msra.mxu0 %v6472_v7  ;;  %v6479_v55 = vld [vmem:[#allocation8 + $0x180] sm:$0xff]   ;;  %v2177_v4 = vld [vmem:[#allocation2 + $0xc8] sm:$0xff]  ;;  %v7272_v7 = vpack.c.bf16 %v3862_v23, %v3861_v53  ;;  %v2569_v53 = vld [vmem:[#allocation2 + $0x3a] sm:$0xff] }
 0x23c   : > { %5846 = vmatprep.mubr.bf16.mxu1 %v7255_v9  ;;  %5860 = vmatprep.subr.bf16.mxu1 %v6473_v16  ;;  %v6513_v23 = vld [vmem:[#allocation8 + $0x208] sm:$0xff]  }
 0x23d   : > { %5600 = vmatprep.subr.bf16.mxu0 %v6474_v35 }
 0x23e   : > { %5861 = vmatpush3.bf16.msra.mxu1 %v6473_v16  ;;  %v6493_v16 = vld [vmem:[#allocation8 + $0x1b8] sm:$0xff]  }
 0x23f   : > { %5601 = vmatpush3.bf16.msra.mxu0 %v6474_v35  ;;  %5862 = vmatprep.subr.bf16.mxu1 %v6475_v12  ;;  %v6494_v35 = vld [vmem:[#allocation8 + $0x1e8] sm:$0xff]  }
 0x240   : > { %5602 = vmatprep.subr.bf16.mxu0 %v6476_v17 }
 0x241   : > { %5847 = vmatmul.mubr.bf16.gmra.mrb[28].mxu1 %v7259_v5 }
 0x242   : > { %5587 = vmatmul.mubr.bf16.gmra.mrb[24].mxu0 %v7163_v59  ;;  %5863 = vmatpush3.bf16.msra.mxu1 %v6475_v12  ;;  %v2180_v59 = vpack.c.bf16 %v2165_v25, %v2164_v47  ;;  %v4065_v12 = vpack.c.bf16 %v4050_v49, %v4049_v8  ;;  %v4053_v25 = vld [vmem:[#allocation2 + $0x120] sm:$0xff]  ;;  %v4054_v47 = vld [vmem:[#allocation2 + $0x128] sm:$0xff] }
 0x243   : > { %5590 = vmatprep.mubr.bf16.mxu0 %v7172_v36  ;;  %5603 = vmatpush3.bf16.msra.mxu0 %v6476_v17  ;;  %v6484_v36 = vld [vmem:[#allocation8 + $0x1c0] sm:$0xff]   ;;  %v6516_v49 = vld [vmem:[#allocation8 + $0x218] sm:$0xff]  }
 0x244   : > { %5866 = vmatprep.mubr.bf16.mxu1 %v7170_v6  ;;  %5864 = vmatprep.subr.bf16.mxu1 %v6477_v39  ;;  %v6483_v6 = vld [vmem:[#allocation8 + $0x190] sm:$0xff]   ;;  %v6495_v17 = vld [vmem:[#allocation8 + $0x1c0] sm:$0xff]  }
 0x245   : > { %5604 = vmatprep.subr.bf16.mxu0 %v6478_v38  ;;  %v2573_v8 = vld [vmem:[#allocation2 + $0x6a] sm:$0xff] }
 0x246   : > { %5865 = vmatpush3.bf16.msra.mxu1 %v6477_v39  ;;  %v4052_v39 = vld [vmem:[#allocation2 + $0x110] sm:$0xff] }
 0x247   : > { %5605 = vmatpush3.bf16.msra.mxu0 %v6478_v38  ;;  %5882 = vmatprep.subr.bf16.mxu1 %v6479_v55  ;;  %v2178_v38 = vld [vmem:[#allocation2 + $0xd8] sm:$0xff] }
 0x248   : > { %5606 = vmatprep.subr.bf16.mxu0 %v6480_v63 }
 0x249   : > { %5867 = vmatmul.mubr.bf16.vlgmr.msra.gmra.mrb[16].mxu1 %v7176_v13  ;;  %v2181_v13 = vpack.c.bf16 %v2167_v37, %v2166_v2  ;;  %v6500_v37 = vld [vmem:[#allocation8 + $0x200] sm:$0xff]   ;;  %v4056_v2 = vld [vmem:[#allocation2 + $0x140] sm:$0xff] }
 0x24a   : > { %5591 = vmatmul.mubr.bf16.gmra.mrb[28].mxu0 %v7166_v60  ;;  %5883 = vmatpush3.bf16.msra.mxu1 %v6479_v55  ;;  %v2182_v60 = vpack.c.bf16 %v2169_v40, %v2168_v41  ;;  %v2179_v55 = vld [vmem:[#allocation2 + $0xe0] sm:$0xff]  ;;  %v4055_v40 = vld [vmem:[#allocation2 + $0x138] sm:$0xff]  ;;  %v4057_v41 = vld [vmem:[#allocation2 + $0x150] sm:$0xff] }
 0x24b   : > { %5607 = vmatpush3.bf16.msra.mxu0 %v6480_v63  ;;  %5610 = vmatprep.mubr.bf16.mxu0 %v2180_v59  ;;  %v4066_v63 = vpack.c.bf16 %v4052_v39, %v4051_v20  ;;  %v6497_v59 = vld [vmem:[#allocation8 + $0x1c8] sm:$0xff]   ;;  %v2578_v20 = vld [vmem:[#allocation2 + $0xaa] sm:$0xff] }
 0x24c   : > { %5870 = vmatprep.mubr.bf16.mxu1 %v7180_v57  ;;  %5884 = vmatprep.subr.bf16.mxu1 %v6481_v43  ;;  %v6487_v57 = vld [vmem:[#allocation8 + $0x1a0] sm:$0xff]  }
 0x24d   : > { %5608 = vmatprep.subr.bf16.mxu0 %v6482_v33  ;;  %v2579_v39 = vld [vmem:[#allocation2 + $0xb2] sm:$0xff] }
 0x24e   : > { %5885 = vmatpush3.bf16.msra.mxu1 %v6481_v43  ;;  %v2187_v43 = vpack.c.bf16 %v2179_v55, %v2178_v38  ;;  %v2580_v55 = vld [vmem:[#allocation2 + $0xc2] sm:$0xff] }
 0x24f   : > { %5609 = vmatpush3.bf16.msra.mxu0 %v6482_v33  ;;  %5886 = vmatprep.subr.bf16.mxu1 %v6483_v6  ;;  %v6498_v33 = vld [vmem:[#allocation8 + $0x1f8] sm:$0xff]  }
 0x250   : > { %5626 = vmatprep.subr.bf16.mxu0 %v6484_v36 }
 0x251   : > { %5871 = vmatmul.mubr.bf16.gmra.mrb[20].mxu1 %v7184_v21  ;;  %v2172_v21 = vld [vmem:[#allocation2 + $0x90] sm:$0xff] }
 0x252   : > { %5611 = vmatmul.mubr.bf16.vlgmr.msra.gmra.mrb[16].mxu0 %v2181_v13  ;;  %5887 = vmatpush3.bf16.msra.mxu1 %v6483_v6  ;;  %v2184_v44 = vpack.c.bf16 %v2173_v54, %v2172_v21  ;;  %v4067_v6 = vpack.c.bf16 %v4054_v47, %v4053_v25  ;;  %v4068_v13 = vpack.c.bf16 %v4056_v2, %v4055_v40  ;;  %v4060_v54 = vld [vmem:[#allocation2 + $0x170] sm:$0xff]  ;;  %v6507_v21 = vld [vmem:[#allocation8 + $0x1f0] sm:$0xff]  }
 0x253   : > { %5614 = vmatprep.mubr.bf16.mxu0 %v2182_v60  ;;  %5627 = vmatpush3.bf16.msra.mxu0 %v6484_v36  ;;  %v6499_v36 = vld [vmem:[#allocation8 + $0x1d0] sm:$0xff]   ;;  %v6501_v60 = vld [vmem:[#allocation8 + $0x1d8] sm:$0xff]   ;;  %v4070_v0 = vpack.c.bf16 %v4060_v54, %v4059_v50  ;;  %v4451_v25 = vld [vmem:[#allocation2 + $0xf2] sm:$0xff] }
 0x254   : > { %5874 = vmatprep.mubr.bf16.mxu1 %v7188_v30  ;;  %5888 = vmatprep.subr.bf16.mxu1 %v6485_v22  ;;  %v6491_v30 = vld [vmem:[#allocation8 + $0x1b0] sm:$0xff]   ;;  %v4456_v2 = vld [vmem:[#allocation2 + $0x12a] sm:$0xff] }
 0x255   : > { %5628 = vmatprep.subr.bf16.mxu0 %v6486_v48  ;;  %v4452_v47 = vld [vmem:[#allocation2 + $0xfa] sm:$0xff]  ;;  %v4455_v40 = vld [vmem:[#allocation2 + $0x122] sm:$0xff]  ;;  %v4461_v54 = vld [vmem:[#allocation2 + $0x16a] sm:$0xff] }
 0x256   : > { %5889 = vmatpush3.bf16.msra.mxu1 %v6485_v22  ;;  %v4058_v22 = vld [vmem:[#allocation2 + $0x158] sm:$0xff] }
 0x257   : > { %5629 = vmatpush3.bf16.msra.mxu0 %v6486_v48  ;;  %5890 = vmatprep.subr.bf16.mxu1 %v6487_v57  ;;  %v6502_v48 = vld [vmem:[#allocation8 + $0x208] sm:$0xff]  }
 0x258   : > { %5630 = vmatprep.subr.bf16.mxu0 %v6488_v52 }
 0x259   : > { %5875 = vmatmul.mubr.bf16.gmra.mrb[24].mxu1 %v7192_v46  ;;  %v2174_v46 = vld [vmem:[#allocation2 + $0xa8] sm:$0xff] }
 0x25a   : > { %5615 = vmatmul.mubr.bf16.gmra.mrb[20].mxu0 %v2183_v28  ;;  %5891 = vmatpush3.bf16.msra.mxu1 %v6487_v57  ;;  %v2185_v27 = vpack.c.bf16 %v2175_v24, %v2174_v46  ;;  %v6503_v57 = vld [vmem:[#allocation8 + $0x1e0] sm:$0xff]   ;;  %v6505_v28 = vld [vmem:[#allocation8 + $0x1e8] sm:$0xff]   ;;  %v6514_v24 = vld [vmem:[#allocation8 + $0x238] sm:$0xff]  }
 0x25b   : > { %5618 = vmatprep.mubr.bf16.mxu0 %v2184_v44  ;;  %5631 = vmatpush3.bf16.msra.mxu0 %v6488_v52  ;;  %v6504_v52 = vld [vmem:[#allocation8 + $0x210] sm:$0xff]   ;;  %v6521_v44 = vld [vmem:[#allocation2 + $0x8] sm:$0xff] }
 0x25c   : > { %5878 = vmatprep.mubr.bf16.mxu1 %v7196_v42  ;;  %5892 = vmatprep.subr.bf16.mxu1 %v6489_v29  ;;  %v2186_v42 = vpack.c.bf16 %v2177_v4, %v2176_v15  ;;  %v2571_v4 = vld [vmem:[#allocation2 + $0x52] sm:$0xff]  ;;  %v2572_v46 = vld [vmem:[#allocation2 + $0x62] sm:$0xff] }
 0x25d   : > { %5632 = vmatprep.subr.bf16.mxu0 %v6490_v61  ;;  %v2575_v15 = vld [vmem:[#allocation2 + $0x82] sm:$0xff] }
 0x25e   : > { %5893 = vmatpush3.bf16.msra.mxu1 %v6489_v29  ;;  %v6508_v29 = vld [vmem:[#allocation8 + $0x220] sm:$0xff]  }
 0x25f   : > { %5633 = vmatpush3.bf16.msra.mxu0 %v6490_v61  ;;  %5894 = vmatprep.subr.bf16.mxu1 %v6491_v30 }
 0x260   : > { %5634 = vmatprep.subr.bf16.mxu0 %v6492_v1 }
 0x261   : > { %5879 = vmatmul.mubr.bf16.gmra.mrb[28].mxu1 %v7272_v7 }
 0x262   : > { %5619 = vmatmul.mubr.bf16.gmra.mrb[24].mxu0 %v2185_v27  ;;  %5895 = vmatpush3.bf16.msra.mxu1 %v6491_v30  ;;  %v6509_v30 = vld [vmem:[#allocation8 + $0x1f8] sm:$0xff]   ;;  %v2574_v27 = vld [vmem:[#allocation2 + $0x7a] sm:$0xff] }
 0x263   : > { %5622 = vmatprep.mubr.bf16.mxu0 %v2186_v42  ;;  %5635 = vmatpush3.bf16.msra.mxu0 %v6492_v1  ;;  %v2568_v1 = vld [vmem:[#allocation2 + $0x32] sm:$0xff]  ;;  %v2577_v42 = vld [vmem:[#allocation2 + $0x9a] sm:$0xff] }
 0x264   : > { %5898 = vmatprep.mubr.bf16.mxu1 %v4065_v12  ;;  %5896 = vmatprep.subr.bf16.mxu1 %v6493_v16  ;;  %v6518_v12 = vld [vmem:[#allocation8 + $0x228] sm:$0xff]  }
 0x265   : > { %5636 = vmatprep.subr.bf16.mxu0 %v6494_v35 }
 0x266   : > { %5897 = vmatpush3.bf16.msra.mxu1 %v6493_v16  ;;  %v2576_v16 = vld [vmem:[#allocation2 + $0x92] sm:$0xff] }
 0x267   : > { %5637 = vmatpush3.bf16.msra.mxu0 %v6494_v35  ;;  %5914 = vmatprep.subr.bf16.mxu1 %v6495_v17  ;;  %v2587_v35 = vpack.c.bf16 %v2575_v15, %v2574_v27 }
 0x268   : > { %5638 = vmatprep.subr.bf16.mxu0 %v6496_v18 }
 0x269   : > { %5899 = vmatmul.mubr.bf16.vlgmr.msra.gmra.mrb[16].mxu1 %v4066_v63  ;;  %v2581_v63 = vld [vmem:[#allocation2 + $0xca] sm:$0xff] }
 0x26a   : > { %5623 = vmatmul.mubr.bf16.gmra.mrb[28].mxu0 %v2187_v43  ;;  %5915 = vmatpush3.bf16.msra.mxu1 %v6495_v17  ;;  %v2588_v17 = vpack.c.bf16 %v2577_v42, %v2576_v16  ;;  %v6520_v43 = vld [vmem:[#allocation8 + $0x238] sm:$0xff]   ;;  %v918_v16 = vld [vmem:[%s6992_s12 + $0x28] sm:$0xff] }
 0x26b   : > { %5639 = vmatpush3.bf16.msra.mxu0 %v6496_v18  ;;  %5642 = vmatprep.mubr.bf16.mxu0 %v7205_v34  ;;  %v4069_v34 = vpack.c.bf16 %v4058_v22, %v4057_v41  ;;  %v4265_v18 = vld [vmem:[#allocation2 + $0x1a1] sm:$0xff]  ;;  %v4469_v22 = vpack.c.bf16 %v4456_v2, %v4455_v40 }
 0x26c   : > { %5902 = vmatprep.mubr.bf16.mxu1 %v4067_v6  ;;  %5916 = vmatprep.subr.bf16.mxu1 %v6497_v59  ;;  %v4453_v6 = vld [vmem:[#allocation2 + $0x10a] sm:$0xff] }
 0x26d   : > { %5640 = vmatprep.subr.bf16.mxu0 %v6498_v33 }
 0x26e   : > { %5917 = vmatpush3.bf16.msra.mxu1 %v6497_v59  ;;  %v2590_v59 = vpack.c.bf16 %v2581_v63, %v2580_v55 }
 0x26f   : > { %5641 = vmatpush3.bf16.msra.mxu0 %v6498_v33  ;;  %5918 = vmatprep.subr.bf16.mxu1 %v6499_v36  ;;  %v4467_v33 = vpack.c.bf16 %v4452_v47, %v4451_v25  ;;  %v921_v47 = vld [vmem:[%s6992_s12 + $0x40] sm:$0xff] }
 0x270   : > { %5658 = vmatprep.subr.bf16.mxu0 %v6500_v37 }
 0x271   : > { %5903 = vmatmul.mubr.bf16.gmra.mrb[20].mxu1 %v4068_v13 }
 0x272   : > { %5643 = vmatmul.mubr.bf16.vlgmr.msra.gmra.mrb[16].mxu0 %v7208_v3  ;;  %5919 = vmatpush3.bf16.msra.mxu1 %v6499_v36  ;;  %v6506_v3 = vld [vmem:[#allocation8 + $0x218] sm:$0xff]   ;;  %v4454_v36 = vld [vmem:[#allocation2 + $0x112] sm:$0xff] }
 0x273   : > { %5646 = vmatprep.mubr.bf16.mxu0 %v7213_v10  ;;  %5659 = vmatpush3.bf16.msra.mxu0 %v6500_v37  ;;  %v4063_v10 = vld [vmem:[#allocation2 + $0x198] sm:$0xff]  ;;  %v2583_v37 = vld [vmem:[#allocation2 + $0xe2] sm:$0xff]  ;;  %v4468_v13 = vpack.c.bf16 %v4454_v36, %v4453_v6 }
 0x274   : > { %5906 = vmatprep.mubr.bf16.mxu1 %v4069_v34  ;;  %5920 = vmatprep.subr.bf16.mxu1 %v6501_v60  ;;  %v4072_v61 = vpack.c.bf16 %v6521_v44, %v4063_v10  ;;  %v4459_v34 = vld [vmem:[#allocation2 + $0x152] sm:$0xff]  ;;  %v4466_v10 = vld [vmem:[#allocation2 + $0x1a2] sm:$0xff]  ;;  %v7296_v44 = vld [vmem:[%s7452_s4] ss:$0 sm:$0xff] }
 0x275   : > { %5660 = vmatprep.subr.bf16.mxu0 %v6502_v48  ;;  %v922_v6 = vld [vmem:[%s6992_s12 + $0x48] sm:$0xff] }
 0x276   : > { %5921 = vmatpush3.bf16.msra.mxu1 %v6501_v60  ;;  %v4457_v60 = vld [vmem:[#allocation2 + $0x13a] sm:$0xff] }
 0x277   : > { %5661 = vmatpush3.bf16.msra.mxu0 %v6502_v48  ;;  %5922 = vmatprep.subr.bf16.mxu1 %v6503_v57  ;;  %v4458_v48 = vld [vmem:[#allocation2 + $0x142] sm:$0xff] }
 0x278   : > { %5662 = vmatprep.subr.bf16.mxu0 %v6504_v52 }
 0x279   : > { %5907 = vmatmul.mubr.bf16.gmra.mrb[24].mxu1 %v4070_v0  ;;  %v4462_v0 = vld [vmem:[#allocation2 + $0x172] sm:$0xff] }
 0x27a   : > { %5647 = vmatmul.mubr.bf16.gmra.mrb[20].mxu0 %v7216_v19  ;;  %5923 = vmatpush3.bf16.msra.mxu1 %v6503_v57  ;;  %v6510_v19 = vld [vmem:[#allocation8 + $0x228] sm:$0xff]  }
 0x27b   : > { %5650 = vmatprep.mubr.bf16.mxu0 %v7223_v26  ;;  %5663 = vmatpush3.bf16.msra.mxu0 %v6504_v52  ;;  %v6511_v26 = vld [vmem:[#allocation8 + $0x200] sm:$0xff]   ;;  %v4460_v57 = vld [vmem:[#allocation2 + $0x15a] sm:$0xff]  ;;  %v4470_v52 = vpack.c.bf16 %v4458_v48, %v4457_v60 }
 0x27c   : > { %5910 = vmatprep.mubr.bf16.mxu1 %v7221_v31  ;;  %5924 = vmatprep.subr.bf16.mxu1 %v6505_v28  ;;  %v6512_v31 = vld [vmem:[#allocation8 + $0x230] sm:$0xff]   ;;  %v4471_v50 = vpack.c.bf16 %v4460_v57, %v4459_v34 }
 0x27d   : > { %5664 = vmatprep.subr.bf16.mxu0 %v6506_v3  ;;  %v2804_v60 = vld [vmem:[%s6992_s12 + $0x90] sm:$0xff] }
 0x27e   : > { %5925 = vmatpush3.bf16.msra.mxu1 %v6505_v28  ;;  %v4472_v28 = vpack.c.bf16 %v4462_v0, %v4461_v54  ;;  %v927_v57 = vld [vmem:[%s6992_s12 + $0x70] sm:$0xff] }
 0x27f   : > { %5665 = vmatpush3.bf16.msra.mxu0 %v6506_v3  ;;  %5926 = vmatprep.subr.bf16.mxu1 %v6507_v21  ;;  %v4465_v3 = vld [vmem:[#allocation2 + $0x19a] sm:$0xff] }
 0x280   : > { %5666 = vmatprep.subr.bf16.mxu0 %v6508_v29 }
 0x281   : > { %5911 = vmatmul.mubr.bf16.gmra.mrb[28].mxu1 %v4072_v61  ;;  %v913_v61 = vld [vmem:[%s6992_s12] sm:$0xff] }
 0x282   : > { %5651 = vmatmul.mubr.bf16.gmra.mrb[24].mxu0 %v7226_v32  ;;  %5927 = vmatpush3.bf16.msra.mxu1 %v6507_v21  ;;  %v2584_v32 = vpack.c.bf16 %v2569_v53, %v2568_v1  ;;  %v4474_v21 = vpack.c.bf16 %v4466_v10, %v4465_v3  ;;  %v2805_v3 = vld [vmem:[%s6992_s12 + $0x98] sm:$0xff] }
 0x283   : > { %5654 = vmatprep.mubr.bf16.mxu0 %v7235_v51  ;;  %5667 = vmatpush3.bf16.msra.mxu0 %v6508_v29  ;;  %v2570_v51 = vld [vmem:[#allocation2 + $0x4a] sm:$0xff]  ;;  %v915_v29 = vld [vmem:[%s6992_s12 + $0x10] sm:$0xff] }
 0x284   : > { %5930 = vmatprep.mubr.bf16.mxu1 %v7233_v58  ;;  %5928 = vmatprep.subr.bf16.mxu1 %v6509_v30  ;;  %v6515_v58 = vld [vmem:[#allocation8 + $0x210] sm:$0xff]  }
 0x285   : > { %5668 = vmatprep.subr.bf16.mxu0 %v6510_v19 }
 0x286   : > { %5929 = vmatpush3.bf16.msra.mxu1 %v6509_v30  ;;  %v916_v30 = vld [vmem:[%s6992_s12 + $0x18] sm:$0xff] }
 0x287   : > { %5669 = vmatpush3.bf16.msra.mxu0 %v6510_v19  ;;  %5946 = vmatprep.subr.bf16.mxu1 %v6511_v26  ;;  %v938_v19 = vadd.f32 %v7296_v44, %v915_v29  ;;  %v2827_v29 = vadd.f32 %v7296_v44, %v2804_v60 }
 0x288   : > { %5670 = vmatprep.subr.bf16.mxu0 %v6512_v31 }
 0x289   : > { %5931 = vmatmul.mubr.bf16.vlgmr.msra.gmra.mrb[16].mxu1 %v7239_v56  ;;  %v2585_v56 = vpack.c.bf16 %v2571_v4, %v2570_v51  ;;  %v919_v51 = vld [vmem:[%s6992_s12 + $0x30] sm:$0xff] }
 0x28a   : > { %5655 = vmatmul.mubr.bf16.gmra.mrb[28].mxu0 %v7229_v14  ;;  %5947 = vmatpush3.bf16.msra.mxu1 %v6511_v26  ;;  %v2586_v14 = vpack.c.bf16 %v2573_v8, %v2572_v46  ;;  %v914_v26 = vld [vmem:[%s6992_s12 + $0x8] sm:$0xff]  ;;  %v942_v15 = vadd.f32 %v7296_v44, %v919_v51 }
 0x28b   : > { %5671 = vmatpush3.bf16.msra.mxu0 %v6512_v31  ;;  %5674 = vmatprep.mubr.bf16.mxu0 %v2584_v32  ;;  %v939_v31 = vadd.f32 %v7296_v44, %v916_v30  ;;  %v937_v53 = vadd.f32 %v7296_v44, %v914_v26  ;;  %v2803_v30 = vld [vmem:[%s6992_s12 + $0x88] sm:$0xff]  ;;  %v950_v26 = vadd.f32 %v7296_v44, %v927_v57  ;;  %v2810_v57 = vld [vmem:[%s6992_s12 + $0xc0] sm:$0xff] }
 0x28c   : > { %5934 = vmatprep.mubr.bf16.mxu1 %v7243_v62  ;;  %5948 = vmatprep.subr.bf16.mxu1 %v6513_v23  ;;  %v6517_v62 = vld [vmem:[#allocation8 + $0x220] sm:$0xff]  }
 0x28d   : > { %5672 = vmatprep.subr.bf16.mxu0 %v6514_v24 }
 0x28e   : > { %5949 = vmatpush3.bf16.msra.mxu1 %v6513_v23 }
 0x28f   : > { %5673 = vmatpush3.bf16.msra.mxu0 %v6514_v24  ;;  %5950 = vmatprep.subr.bf16.mxu1 %v6515_v58 }
 0x291   : > { %5935 = vmatmul.mubr.bf16.gmra.mrb[20].mxu1 %v7247_v45  ;;  %v4264_v45 = vld [vmem:[#allocation2 + $0x199] sm:$0xff] }
 0x292   : > { %5675 = vmatmul.mubr.bf16.vlgmr.msra.gmra.mrb[16].mxu0 %v2585_v56  ;;  %5951 = vmatpush3.bf16.msra.mxu1 %v6515_v58  ;;  %v4273_v38 = vpack.c.bf16 %v4265_v18, %v4264_v45  ;;  %v917_v56 = vld [vmem:[%s6992_s12 + $0x20] sm:$0xff]  ;;  %v941_v45 = vadd.f32 %v7296_v44, %v918_v16 }
 0x293   : > { %5678 = vmatprep.mubr.bf16.mxu0 %v2586_v14  ;;  %5938 = vmatprep.mubr.bf16.mxu1 %v7251_v11  ;;  %v6519_v11 = vld [vmem:[#allocation8 + $0x230] sm:$0xff]  }
 0x294   : > { %5952 = vmatprep.subr.bf16.mxu1 %v6516_v49 }
 0x296   : > { %5953 = vmatpush3.bf16.msra.mxu1 %v6516_v49 }
 0x297   : > { %5954 = vmatprep.subr.bf16.mxu1 %v6517_v62 }
 0x299   : > { %5939 = vmatmul.mubr.bf16.gmra.mrb[24].mxu1 %v7255_v9  ;;  %v2589_v9 = vpack.c.bf16 %v2579_v39, %v2578_v20 }
 0x29a   : > { %5679 = vmatmul.mubr.bf16.gmra.mrb[20].mxu0 %v2587_v35  ;;  %5955 = vmatpush3.bf16.msra.mxu1 %v6517_v62  ;;  %v920_v62 = vld [vmem:[%s6992_s12 + $0x38] sm:$0xff]  ;;  %v940_v35 = vadd.f32 %v7296_v44, %v917_v56 }
 0x29b   : > { %5682 = vmatprep.mubr.bf16.mxu0 %v2588_v17  ;;  %5942 = vmatprep.mubr.bf16.mxu1 %v7259_v5  ;;  %v2582_v5 = vld [vmem:[#allocation2 + $0xda] sm:$0xff] }
 0x29c   : > { %5956 = vmatprep.subr.bf16.mxu1 %v6518_v12  ;;  %v2591_v41 = vpack.c.bf16 %v2583_v37, %v2582_v5  ;;  %v944_v37 = vadd.f32 %v7296_v44, %v921_v47 }
 0x29e   : > { %5957 = vmatpush3.bf16.msra.mxu1 %v6518_v12  ;;  %v943_v12 = vadd.f32 %v7296_v44, %v920_v62 }
 0x29f   : > { %5958 = vmatprep.subr.bf16.mxu1 %v6519_v11 }
 0x2a1   : > { %5943 = vmatmul.mubr.bf16.gmra.mrb[28].mxu1 %v4273_v38  ;;  %v923_v38 = vld [vmem:[%s6992_s12 + $0x50] sm:$0xff] }
 0x2a2   : > { %5683 = vmatmul.mubr.bf16.gmra.mrb[24].mxu0 %v2589_v9  ;;  %5959 = vmatpush3.bf16.msra.mxu1 %v6519_v11  ;;  %v946_v5 = vadd.f32 %v7296_v44, %v923_v38  ;;  %v2809_v38 = vld [vmem:[%s6992_s12 + $0xb8] sm:$0xff] }
 0x2a3   : > { %5686 = vmatprep.mubr.bf16.mxu0 %v2590_v59  ;;  %5962 = vmatprep.mubr.bf16.mxu1 %v4467_v33  ;;  %v924_v59 = vld [vmem:[%s6992_s12 + $0x58] sm:$0xff] }
 0x2a4   : > { %5960 = vmatprep.subr.bf16.mxu1 %v6520_v43  ;;  %v947_v40 = vadd.f32 %v7296_v44, %v924_v59 }
 0x2a6   : > { %5961 = vmatpush3.bf16.msra.mxu1 %v6520_v43 }
 0x2a9   : > { %5963 = vmatmul.mubr.bf16.vlgmr.msra.gmra.mrb[16].mxu1 %v4468_v13  ;;  %v945_v13 = vadd.f32 %v7296_v44, %v922_v6  ;;  %v2832_v6 = vadd.f32 %v7296_v44, %v2809_v38 }
 0x2aa   : > { %5687 = vmatmul.mubr.bf16.gmra.mrb[28].mxu0 %v2591_v41  ;;  %5966 = vmatprep.mubr.bf16.mxu1 %v4469_v22 }
 0x2b1   : > { %5967 = vmatmul.mubr.bf16.gmra.mrb[20].mxu1 %v4470_v52  ;;  %v2802_v52 = vld [vmem:[%s6992_s12 + $0x80] sm:$0xff] }
 0x2b2   : > { %5970 = vmatprep.mubr.bf16.mxu1 %v4471_v50 }
 0x2b9   : > { %5971 = vmatmul.mubr.bf16.gmra.mrb[24].mxu1 %v4472_v28  ;;  %v925_v28 = vld [vmem:[%s6992_s12 + $0x60] sm:$0xff] }
 0x2ba   : > { %5974 = vmatprep.mubr.bf16.mxu1 %v7272_v7  ;;  %v936_v7 = vadd.f32 %v7296_v44, %v913_v61  ;;  %v928_v61 = vld [vmem:[%s6992_s12 + $0x78] sm:$0xff] }
 0x2c1   : > { %5975 = vmatmul.mubr.bf16.gmra.mrb[28].mxu1 %v4474_v21 }
 0x365   : > { %v5676_v1 = vpop.f32.mrb[16].mxu0 }
 0x366   : > { %v5978_v23 = vadd.f32 %v5676_v1, %v938_v19  ;;  %v2691_v32 = vpop.f32.mrb[17].mxu0 }
 0x367   : > { %v5979_v24 = vadd.f32 %v2691_v32, %v936_v7  ;;  %v5677_v58 = vpop.f32.mrb[18].mxu0  ;;  %v2825_v7 = vadd.f32 %v7296_v44, %v2802_v52 }
 0x368   : > { %v2772_v4 = vmax.f32 %v5978_v23, 0.0  ;;  %v5980_v46 = vadd.f32 %v5677_v58, %v939_v31  ;;  %v2694_v8 = vpop.f32.mrb[19].mxu0  ;;  %v926_v31 = vld [vmem:[%s6992_s12 + $0x68] sm:$0xff]  ;;  %v2828_v23 = vadd.f32 %v7296_v44, %v2805_v3  ;;  %v2826_v58 = vadd.f32 %v7296_v44, %v2803_v30 }
 0x369   : > { %v2770_v49 = vmax.f32 %v5979_v24, 0.0  ;;  %v5981_v14 = vadd.f32 %v2694_v8, %v937_v53  ;;  %v948_v53 = vadd.f32 %v7296_v44, %v925_v28  ;;  %v951_v24 = vadd.f32 %v7296_v44, %v928_v61  ;;  %v2811_v3 = vld [vmem:[%s6992_s12 + $0xc8] sm:$0xff] }
 0x36a   : > { %2788 = vst [vmem:[%s7310_s16 + $0x10] sm:$0xff] %v2772_v4  ;;  %v2773_v27 = vmax.f32 %v5980_v46, 0.0  ;;  %v949_v8 = vadd.f32 %v7296_v44, %v926_v31  ;;  %v2834_v30 = vadd.f32 %v7296_v44, %v2811_v3 }
 0x36b   : > { %2786 = vst [vmem:[%s7310_s16] sm:$0xff] %v2770_v49  ;;  %v2771_v42 = vmax.f32 %v5981_v14, 0.0 }
 0x36c   : > { %2789 = vst [vmem:[%s7310_s16 + $0x18] sm:$0xff] %v2773_v27  ;;  %v2808_v27 = vld [vmem:[%s6992_s12 + $0xb0] sm:$0xff] }
 0x36d   : > { %2787 = vst [vmem:[%s7310_s16 + $0x8] sm:$0xff] %v2771_v42  ;;  %v5680_v17 = vpop.f32.mrb[20].mxu0  ;;  %v2831_v47 = vadd.f32 %v7296_v44, %v2808_v27 }
 0x36e   : > { %v5982_v18 = vadd.f32 %v5680_v17, %v942_v15  ;;  %v2707_v11 = vpop.f32.mrb[21].mxu0  ;;  %v2806_v17 = vld [vmem:[%s6992_s12 + $0xa0] sm:$0xff] }
 0x36f   : > { %v5983_v20 = vadd.f32 %v2707_v11, %v940_v35  ;;  %v5681_v39 = vpop.f32.mrb[22].mxu0 }
 0x370   : > { %v2776_v55 = vmax.f32 %v5982_v18, 0.0  ;;  %v5984_v63 = vadd.f32 %v5681_v39, %v943_v12  ;;  %v2710_v25 = vpop.f32.mrb[23].mxu0 }
 0x371   : > { %v2774_v9 = vmax.f32 %v5983_v20, 0.0  ;;  %v5985_v43 = vadd.f32 %v2710_v25, %v941_v45 }
 0x372   : > { %2792 = vst [vmem:[%s7310_s16 + $0x30] sm:$0xff] %v2776_v55  ;;  %v2777_v33 = vmax.f32 %v5984_v63, 0.0 }
 0x373   : > { %2790 = vst [vmem:[%s7310_s16 + $0x20] sm:$0xff] %v2774_v9  ;;  %v2775_v36 = vmax.f32 %v5985_v43, 0.0  ;;  %v2807_v9 = vld [vmem:[%s6992_s12 + $0xa8] sm:$0xff] }
 0x374   : > { %2793 = vst [vmem:[%s7310_s16 + $0x38] sm:$0xff] %v2777_v33  ;;  %v2829_v33 = vadd.f32 %v7296_v44, %v2806_v17 }
 0x375   : > { %2791 = vst [vmem:[%s7310_s16 + $0x28] sm:$0xff] %v2775_v36  ;;  %v5684_v2 = vpop.f32.mrb[24].mxu0 }
 0x376   : > { %v5986_v41 = vadd.f32 %v5684_v2, %v946_v5  ;;  %v2723_v22 = vpop.f32.mrb[25].mxu0 }
 0x377   : > { %v5987_v48 = vadd.f32 %v2723_v22, %v944_v37  ;;  %v5685_v34 = vpop.f32.mrb[26].mxu0  ;;  %v2830_v37 = vadd.f32 %v7296_v44, %v2807_v9  ;;  %v2812_v22 = vld [vmem:[%s6992_s12 + $0xd0] sm:$0xff] }
 0x378   : > { %v2780_v50 = vmax.f32 %v5986_v41, 0.0  ;;  %v5988_v54 = vadd.f32 %v5685_v34, %v947_v40  ;;  %v2726_v0 = vpop.f32.mrb[27].mxu0  ;;  %v2835_v28 = vadd.f32 %v7296_v44, %v2812_v22 }
 0x379   : > { %v2778_v10 = vmax.f32 %v5987_v48, 0.0  ;;  %v5989_v21 = vadd.f32 %v2726_v0, %v945_v13 }
 0x37a   : > { %2796 = vst [vmem:[%s7310_s16 + $0x50] sm:$0xff] %v2780_v50  ;;  %v2781_v19 = vmax.f32 %v5988_v54, 0.0  ;;  %v2813_v54 = vld [vmem:[%s6992_s12 + $0xd8] sm:$0xff] }
 0x37b   : > { %2794 = vst [vmem:[%s7310_s16 + $0x40] sm:$0xff] %v2778_v10  ;;  %v2779_v1 = vmax.f32 %v5989_v21, 0.0  ;;  %v2833_v21 = vadd.f32 %v7296_v44, %v2810_v57 }
 0x37c   : > { %2797 = vst [vmem:[%s7310_s16 + $0x58] sm:$0xff] %v2781_v19  ;;  %v5964_v32 = vpop.f32.mrb[16].mxu1 }
 0x37d   : > { %2795 = vst [vmem:[%s7310_s16 + $0x48] sm:$0xff] %v2779_v1  ;;  %v5688_v51 = vpop.f32.mrb[28].mxu0  ;;  %v5994_v4 = vadd.f32 %v5964_v32, %v2827_v29  ;;  %v4573_v46 = vpop.f32.mrb[17].mxu1  ;;  %v2836_v29 = vadd.f32 %v7296_v44, %v2813_v54  ;;  %v2816_v1 = vld [vmem:[%s6992_s12 + $0xf0] sm:$0xff] }
 0x37e   : > { %v5990_v56 = vadd.f32 %v5688_v51, %v950_v26  ;;  %v2739_v49 = vpop.f32.mrb[29].mxu0  ;;  %v5995_v14 = vadd.f32 %v4573_v46, %v2825_v7  ;;  %v5965_v62 = vpop.f32.mrb[18].mxu1 }
 0x37f   : > { %v4654_v15 = vmax.f32 %v5994_v4, 0.0  ;;  %v5991_v16 = vadd.f32 %v2739_v49, %v948_v53  ;;  %v5689_v42 = vpop.f32.mrb[30].mxu0  ;;  %v5996_v35 = vadd.f32 %v5965_v62, %v2828_v23  ;;  %v4576_v12 = vpop.f32.mrb[19].mxu1  ;;  %v2817_v4 = vld [vmem:[%s6992_s12 + $0xf8] sm:$0xff] }
 0x380   : > { %v2784_v45 = vmax.f32 %v5990_v56, 0.0  ;;  %v4652_v18 = vmax.f32 %v5995_v14, 0.0  ;;  %v5992_v11 = vadd.f32 %v5689_v42, %v951_v24  ;;  %v2742_v20 = vpop.f32.mrb[31].mxu0  ;;  %v5997_v39 = vadd.f32 %v4576_v12, %v2826_v58  ;;  %v2814_v24 = vld [vmem:[%s6992_s12 + $0xe0] sm:$0xff]  ;;  %v2815_v56 = vld [vmem:[%s6992_s12 + $0xe8] sm:$0xff] }
 0x381   : > { %4670 = vst [vmem:[%s7310_s16 + $0x90] sm:$0xff] %v4654_v15  ;;  %v2782_v55 = vmax.f32 %v5991_v16, 0.0  ;;  %v4655_v63 = vmax.f32 %v5996_v35, 0.0  ;;  %v5993_v25 = vadd.f32 %v2742_v20, %v949_v8  ;;  %v2839_v8 = vadd.f32 %v7296_v44, %v2816_v1 }
 0x382   : > { %2800 = vst [vmem:[%s7310_s16 + $0x70] sm:$0xff] %v2784_v45  ;;  %4668 = vst [vmem:[%s7310_s16 + $0x80] sm:$0xff] %v4652_v18  ;;  %v2785_v43 = vmax.f32 %v5992_v11, 0.0  ;;  %v4653_v59 = vmax.f32 %v5997_v39, 0.0  ;;  %v2837_v14 = vadd.f32 %v7296_v44, %v2814_v24  ;;  %v2840_v62 = vadd.f32 %v7296_v44, %v2817_v4 }
 0x383   : > { %2798 = vst [vmem:[%s7310_s16 + $0x60] sm:$0xff] %v2782_v55  ;;  %4671 = vst [vmem:[%s7310_s16 + $0x98] sm:$0xff] %v4655_v63  ;;  %v2783_v5 = vmax.f32 %v5993_v25, 0.0  ;;  %v2838_v15 = vadd.f32 %v7296_v44, %v2815_v56 }
 0x384   : > { %2801 = vst [vmem:[%s7310_s16 + $0x78] sm:$0xff] %v2785_v43  ;;  %4669 = vst [vmem:[%s7310_s16 + $0x88] sm:$0xff] %v4653_v59  ;;  %v5968_v36 = vpop.f32.mrb[20].mxu1 }
 0x385   : > { %2799 = vst [vmem:[%s7310_s16 + $0x68] sm:$0xff] %v2783_v5  ;;  %v5998_v40 = vadd.f32 %v5968_v36, %v2831_v47  ;;  %v4589_v2 = vpop.f32.mrb[21].mxu1 }
 0x386   : > { %v5999_v13 = vadd.f32 %v4589_v2, %v2829_v33  ;;  %v5969_v41 = vpop.f32.mrb[22].mxu1 }
 0x387   : > { %v4658_v60 = vmax.f32 %v5998_v40, 0.0  ;;  %v6000_v48 = vadd.f32 %v5969_v41, %v2832_v6  ;;  %v4592_v34 = vpop.f32.mrb[23].mxu1 }
 0x388   : > { %v4656_v52 = vmax.f32 %v5999_v13, 0.0  ;;  %v6001_v50 = vadd.f32 %v4592_v34, %v2830_v37 }
 0x389   : > { %4674 = vst [vmem:[%s7310_s16 + $0xb0] sm:$0xff] %v4658_v60  ;;  %v4659_v0 = vmax.f32 %v6000_v48, 0.0 }
 0x38a   : > { %4672 = vst [vmem:[%s7310_s16 + $0xa0] sm:$0xff] %v4656_v52  ;;  %v4657_v10 = vmax.f32 %v6001_v50, 0.0 }
 0x38b   : > { %4675 = vst [vmem:[%s7310_s16 + $0xb8] sm:$0xff] %v4659_v0 }
 0x38c   : > { %4673 = vst [vmem:[%s7310_s16 + $0xa8] sm:$0xff] %v4657_v10  ;;  %v5972_v61 = vpop.f32.mrb[24].mxu1 }
 0x38d   : > { %v6002_v19 = vadd.f32 %v5972_v61, %v2835_v28  ;;  %v4605_v26 = vpop.f32.mrb[25].mxu1 }
 0x38e   : > { %v6003_v7 = vadd.f32 %v4605_v26, %v2833_v21  ;;  %v5973_v31 = vpop.f32.mrb[26].mxu1 }
 0x38f   : > { %v4662_v53 = vmax.f32 %v6002_v19, 0.0  ;;  %v6004_v23 = vadd.f32 %v5973_v31, %v2836_v29  ;;  %v4608_v32 = vpop.f32.mrb[27].mxu1 }
 0x390   : > { %v4660_v58 = vmax.f32 %v6003_v7, 0.0  ;;  %v6005_v51 = vadd.f32 %v4608_v32, %v2834_v30 }
 0x391   : > { %4678 = vst [vmem:[%s7310_s16 + $0xd0] sm:$0xff] %v4662_v53  ;;  %v4663_v46 = vmax.f32 %v6004_v23, 0.0 }
 0x392   : > { %4676 = vst [vmem:[%s7310_s16 + $0xc0] sm:$0xff] %v4660_v58  ;;  %v4661_v49 = vmax.f32 %v6005_v51, 0.0 }
 0x393   : > { %4679 = vst [vmem:[%s7310_s16 + $0xd8] sm:$0xff] %v4663_v46 }
 0x394   : > { %4677 = vst [vmem:[%s7310_s16 + $0xc8] sm:$0xff] %v4661_v49  ;;  %v5976_v27 = vpop.f32.mrb[28].mxu1 }
 0x395   : > { %v6006_v16 = vadd.f32 %v5976_v27, %v2839_v8  ;;  %v4621_v42 = vpop.f32.mrb[29].mxu1 }
 0x396   : > { %v6007_v35 = vadd.f32 %v4621_v42, %v2837_v14  ;;  %v5977_v12 = vpop.f32.mrb[30].mxu1 }
 0x397   : > { %v4666_v17 = vmax.f32 %v6006_v16, 0.0  ;;  %v6008_v45 = vadd.f32 %v5977_v12, %v2840_v62  ;;  %v4624_v18 = vpop.f32.mrb[31].mxu1 }
 0x398   : > { %v4664_v11 = vmax.f32 %v6007_v35, 0.0  ;;  %v6009_v20 = vadd.f32 %v4624_v18, %v2838_v15 }
 0x399   : > { %4682 = vst [vmem:[%s7310_s16 + $0xf0] sm:$0xff] %v4666_v17  ;;  %v4667_v39 = vmax.f32 %v6008_v45, 0.0 }
 0x39a   : > { %4680 = vst [vmem:[%s7310_s16 + $0xe0] sm:$0xff] %v4664_v11  ;;  %v4665_v44 = vmax.f32 %v6009_v20, 0.0 }
 0x39b   : > { %4683 = vst [vmem:[%s7310_s16 + $0xf8] sm:$0xff] %v4667_v39 }
 0x39c   : > { %4681 = vst [vmem:[%s7310_s16 + $0xe8] sm:$0xff] %v4665_v44 }
 0x39d   : > { %6651 = shalt.err (!%p6648_p3)
}
 0x39e   : > { %s6652_s11 = scalar_lea.hbm %s7399_s26, 4096  ;;  %s6656_s8 = scalar_lea.hbm %s7454_s6, 8192 }
 0x39f   : > { %p6653_p9 = scmp.ne.s32.totalorder %s7399_s26, %s6652_s11  ;;  %p6657_p7 = scmp.lt.u32.totalorder %s7399_s26, %s7454_s6 }
 0x3a0   : > { %p6658_p5 = scmp.lt.u32.totalorder %s6656_s8, %s6652_s11  ;;  %p6660_p8 = scmp.lt.u32.totalorder %s6652_s11, %s7399_s26 }
 0x3a1   : > { %p6654_p10 = pnand %p6653_p9, %p7478_p4 }
 0x3a2   : > { %p6659_p1 = por %p6658_p5, %p6657_p7 }
 0x3a3   : > { %p6655_p6 = pneg %p6654_p10 }
 0x3a4   : > { %p6661_p2 = por %p6660_p8, %p6659_p1 }
 0x3a6   : > { %p6662_p11 = pnand %p6661_p2, %p6655_p6 }
 0x3a8   : > { %6665 = shalt.err (!%p6662_p11)
}
 0x3a9   : > { %s6724_s30 = smov 128   ;;  %s6725_s16 = smov 8  }
 0x3aa   : > { %6278 = dma.vmem_to_hbm [thread:$0]  (%p7478_p4), %s7401_s27, 4096, %s7399_s26, %s4685_s25, %s6724_s30, %s6724_s30, %s6725_s16  }
 0x3ab PF: > { %s7479_s13 = sld [smem:[#allocation18_spill]]  ;;  %s4713_s7 = sand.u32 1, %s6700_s21  }
 0x3ac   : > { %p7481_p0 = scmp.ge.s32.totalorder %s6712_s24, 2  ;;  %s4714_s19 = scalar_lea.sflag [#allocation5], %s4713_s7 }
 0x3b1   : > { %p7480_p13 = scmp.ne.s32.totalorder %s7479_s13, 0 }
 0x3b3   : > { %p6295_p12 = pnand %p7481_p0, %p7480_p13 }
 0x3b5   : > { %6695 = dma.done.wait (!%p6295_p12), %s4714_s19, 4096  }
 0x3b6   : > { %6697 = vsyncadd (!%p6295_p12), %s4714_s19, 4294963200  ;;  %s7482_s24 = sld [smem:[#allocation16_spill]]  ;;  %s7483_s10 = sld [smem:[#allocation17_spill]] }
 0x3b7   : > { %s7484_s21 = smov %s6704_s22  ;;  %s7485_s22 = smov %s6708_s23 }
 0x3bc   : > { %p23_p3 = scmp.ge.s32.totalorder %s7482_s24, 4   ;;  %s7486_s23 = smov %s7483_s10 }
 0x3be   :  { %25 = sbr.rel (!%p23_p3) target bundleno = 8 (0x8), region = 124 }
 0x3c5   :  { %4719 = vsyncpa [#allocation4], 1 }
 0x3c6   :  { %4721 = vsyncpa [#allocation4 + $0x1], 1 }
 0x3c7   :  { %4722 = vsyncpa [#allocation7], 1 }
 0x3c8   :  { %4723 = vsyncpa [#allocation10], 1 }
 0x3c9   :  { %4725 = vsyncpa [#allocation10 + $0x1], 1 }
 0x3ca   :  { %4726 = vsyncpa [#allocation5], 1 }
 0x3cb   :  { %4728 = vsyncpa [#allocation5 + $0x1], 1 }

</bundles_post_ra>
